<compile_context>
chip_gen: v7x
topology: tpu7x:2x2x1
jax: 0.10.0
libtpu: 0.0.40
codegen_flags: <defaults>
</compile_context>

<pallas_src>
import jax
import jax.numpy as jnp
import numpy as np
from jax.experimental import pallas as pl
from jax.experimental.pallas import tpu as pltpu

TAU = 12          # TemporalPooling window
BETA = 0.5
_PAD = 16         # 8-aligned left padding (>= TAU-1) of the q scratch buffer
_LANES = 128


def _round_up(v, m):
    return (v + m - 1) // m * m


# --------------------------------------------------------------------------- #
# Stage 1: fused fc0 + input-to-hidden GRU projection, row-tiled over (B*T, Din)
# --------------------------------------------------------------------------- #
def _fc_gx_kernel(x_ref, w_ref, b_ref, gx_ref):
    # x_ref: (tn, Din) block; w_ref: (Din, HP) bf16; b_ref: (1, HP) f32.
    x_bf = x_ref[...].astype(jnp.bfloat16)                 # no-op if x is bf16
    gx_ref[...] = (jnp.dot(x_bf, w_ref[...],
                           preferred_element_type=jnp.float32) + b_ref[...])


# --------------------------------------------------------------------------- #
# Stage 2: GRU recurrence + fused score head + TemporalPooling + masked mean,
#          one program per batch tile.
# --------------------------------------------------------------------------- #
def _gru_pool_kernel(gxr_ref, gxz_ref, gxn_ref, whh_ref, bhh_ref, wq_ref,
                     bq_ref, len_ref, score_ref, q_scr):
    T, Bt, H = gxr_ref.shape
    PEXT = q_scr.shape[0]

    # ---- hoisted, loop-invariant loads / slices (done once per program) ----
    whh = whh_ref[...]                                     # (H, 3H) bf16
    whh_r, whh_z, whh_n = whh[:, 0:H], whh[:, H:2 * H], whh[:, 2 * H:3 * H]
    bhh = bhh_ref[...]                                     # (1, 3H) f32
    bhh_r, bhh_z, bhh_n = bhh[:, 0:H], bhh[:, H:2 * H], bhh[:, 2 * H:3 * H]
    wq = wq_ref[...]                                       # (1, H)
    bq = bq_ref[0, 0]

    # q scratch padded with +inf: left pad = neutral element for the causal min,
    # rows beyond the clip are masked to 0 for the forward weighted sums.
    q_scr[...] = jnp.full((PEXT, Bt), jnp.inf, dtype=jnp.float32)

    # One GRU cell (PyTorch gate order [r, z, n]); h stays f32, matmuls bf16.
    def cell(t, h):
        hb = h.astype(jnp.bfloat16)
        g_r = jnp.dot(hb, whh_r, preferred_element_type=jnp.float32) + bhh_r
        g_z = jnp.dot(hb, whh_z, preferred_element_type=jnp.float32) + bhh_z
        g_n = jnp.dot(hb, whh_n, preferred_element_type=jnp.float32) + bhh_n
        r = jax.nn.sigmoid(gxr_ref[t] + g_r)
        z = jax.nn.sigmoid(gxz_ref[t] + g_z)
        n = jnp.tanh(gxn_ref[t] + r * g_n)
        return (1.0 - z) * n + z * h

    h0 = jnp.zeros((Bt, H), jnp.float32)
    nb, rem = T // 8, T % 8
    row8 = jax.lax.broadcasted_iota(jnp.int32, (8, Bt), 0)   # hoisted

    # 8-step unrolled window: build the (8, Bt) q block in registers (pure VPU
    # selects, no concat) and issue a single sublane-aligned store per window.
    def block_step(j, h):
        base = j * 8
        qblk = jnp.zeros((8, Bt), jnp.float32)
        for i in range(8):                                   # static unroll
            h = cell(base + i, h)
            q_t = jnp.sum(h * wq, axis=-1) + bq              # (Bt,)
            qblk = jnp.where(row8 == i, q_t[None, :], qblk)
        off = pl.multiple_of(_PAD + base, 8)
        q_scr[pl.ds(off, 8), :] = qblk
        return h

    h = jax.lax.fori_loop(0, nb, block_step, h0)
    for i in range(rem):                                     # static tail (< 8)
        t = nb * 8 + i
        h = cell(t, h)
        q_t = jnp.sum(h * wq, axis=-1) + bq
        q_scr[pl.ds(_PAD + t, 1), :] = q_t.reshape(1, Bt)

    # ---- TemporalPooling(tau, beta): O(T*tau) shifted-window form ----
    q_ext = q_scr[...]                                       # (PEXT, Bt), hoisted
    L = jnp.minimum(len_ref[:, 0], T)                        # (Bt,) int32, clamped
    row = jax.lax.broadcasted_iota(jnp.int32, (PEXT, Bt), 0)
    in_clip = (row >= _PAD) & (row < _PAD + L[None, :])      # frame k in [0, L)
    e_ext = jnp.where(in_clip, jnp.exp(-q_ext), 0.0)
    qe_ext = jnp.where(in_clip, q_ext, 0.0) * e_ext          # no inf*0 pre-mask

    l_min = q_ext[_PAD:_PAD + T, :]                          # d = 0 terms
    num = qe_ext[_PAD:_PAD + T, :]
    den = e_ext[_PAD:_PAD + T, :]
    for d in range(1, TAU):                                  # remaining windows
        l_min = jnp.minimum(l_min, q_ext[_PAD - d:_PAD - d + T, :])   # causal min
        num = num + qe_ext[_PAD + d:_PAD + d + T, :]                  # forward sums
        den = den + e_ext[_PAD + d:_PAD + d + T, :]
    pooled = BETA * (num / den) + (1.0 - BETA) * l_min       # (T, Bt)

    # masked temporal mean per clip
    t_idx = jax.lax.broadcasted_iota(jnp.int32, (T, Bt), 0)
    valid = t_idx < L[None, :]
    denom = jnp.maximum(L, 1).astype(jnp.float32)
    score = jnp.sum(jnp.where(valid, pooled, 0.0), axis=0) / denom
    score_ref[...] = score.reshape(Bt, 1)


# --------------------------------------------------------------------------- #
# Wrapper
# --------------------------------------------------------------------------- #
@jax.jit
def i3d_resnet_vqa_forward(x, input_length, params):
    """x: (B, T, D_in) batch-first features; input_length: (B,) float/int."""
    B, T, Din = x.shape
    H = params["whh"].shape[0]
    H3 = 3 * H
    HP = _round_up(H3, _LANES)
    N = B * T

    # ---- fused stage-1 weights (exact: ANN(n_layers=1) == fc0, no activation) ----
    W1 = params["w0"] @ params["wih"]                        # (Din, 3H) f32
    b1 = params["b0"] @ params["wih"] + params["bih"]        # (1, 3H)
    W1 = jnp.pad(W1, ((0, 0), (0, HP - H3))).astype(jnp.bfloat16)
    b1 = jnp.pad(b1, ((0, 0), (0, HP - H3)))

    # ---- stage 1: gx = x @ W1 + b1, row-tiled / pipelined / megacore-parallel ----
    x_flat = x.reshape(N, Din)                               # free reshape
    tn = N if N <= 512 else 512                              # bigger tile (review)
    gx_flat = pl.pallas_call(
        _fc_gx_kernel,
        out_shape=jax.ShapeDtypeStruct((N, HP), jnp.float32),
        grid=(pl.cdiv(N, tn),),
        in_specs=[
            pl.BlockSpec((tn, Din), lambda i: (i, 0)),
            pl.BlockSpec((Din, HP), lambda i: (0, 0)),
            pl.BlockSpec((1, HP), lambda i: (0, 0)),
        ],
        out_specs=pl.BlockSpec((tn, HP), lambda i: (i, 0)),   # lane-dense (128)
        compiler_params=pltpu.CompilerParams(
            dimension_semantics=("parallel",),
            vmem_limit_bytes=32 * 1024 * 1024),
    )(x_flat, W1, b1)

    # ---- small-tensor reorg (XLA): per-gate, time-major (T, B, H) ----
    gx = gx_flat.reshape(B, T, HP)
    gxr = jnp.transpose(gx[:, :, 0:H], (1, 0, 2))
    gxz = jnp.transpose(gx[:, :, H:2 * H], (1, 0, 2))
    gxn = jnp.transpose(gx[:, :, 2 * H:H3], (1, 0, 2))

    whh_bf = params["whh"].astype(jnp.bfloat16)              # bf16 on the MXU
    lens = input_length.astype(jnp.int32).reshape(B, 1)      # int() truncation

    # ---- stage 2: GRU + q head + TemporalPooling, gridded over batch tiles ----
    Bt = B if B <= 16 else 8
    PEXT = _PAD + _round_up(T + TAU - 1, 8)
    gate_spec = pl.BlockSpec((T, Bt, H), lambda b: (0, b, 0))

    def const(shape):
        return pl.BlockSpec(shape, lambda b: (0, 0))

    score = pl.pallas_call(
        _gru_pool_kernel,
        out_shape=jax.ShapeDtypeStruct((B, 1), jnp.float32),
        grid=(pl.cdiv(B, Bt),),
        in_specs=[
            gate_spec, gate_spec, gate_spec,
            const((H, H3)), const((1, H3)), const((1, H)), const((1, 1)),
            pl.BlockSpec((Bt, 1), lambda b: (b, 0)),
        ],
        out_specs=pl.BlockSpec((Bt, 1), lambda b: (b, 0)),
        scratch_shapes=[pltpu.VMEM((PEXT, Bt), jnp.float32)],
        compiler_params=pltpu.CompilerParams(
            dimension_semantics=("parallel",),
            vmem_limit_bytes=32 * 1024 * 1024),
    )(gxr, gxz, gxn, whh_bf, params["bhh"], params["wq"], params["bq"], lens)
    return score[:, 0]                                       # (B,) float32


def init_params(key, input_size, reduced_size, hidden_size):
    ks = jax.random.split(key, 8)
    s = 0.05
    return {
        # ANN.fc0 (Linear input_size -> reduced_size), stored (in, out)
        "w0": s * jax.random.normal(ks[0], (input_size, reduced_size), jnp.float32),
        "b0": s * jax.random.normal(ks[1], (1, reduced_size), jnp.float32),
        # GRU weights, gate order [r, z, n], stored (in, 3H) / (H, 3H)
        "wih": s * jax.random.normal(ks[2], (reduced_size, 3 * hidden_size), jnp.float32),
        "whh": s * jax.random.normal(ks[3], (hidden_size, 3 * hidden_size), jnp.float32),
        "bih": s * jax.random.normal(ks[4], (1, 3 * hidden_size), jnp.float32),
        "bhh": s * jax.random.normal(ks[5], (1, 3 * hidden_size), jnp.float32),
        # q head (Linear hidden_size -> 1)
        "wq": s * jax.random.normal(ks[6], (1, hidden_size), jnp.float32),
        "bq": s * jax.random.normal(ks[7], (1, 1), jnp.float32),
    }


# --------------------------------------------------------------------------- #
# Pure-NumPy reference of the PyTorch forward pass (for the in-script check).
# --------------------------------------------------------------------------- #
def _reference_forward(x, input_length, params):
    x = np.asarray(x, np.float64)
    w0 = np.asarray(params["w0"], np.float64); b0 = np.asarray(params["b0"], np.float64)
    wih = np.asarray(params["wih"], np.float64); bih = np.asarray(params["bih"], np.float64)
    whh = np.asarray(params["whh"], np.float64); bhh = np.asarray(params["bhh"], np.float64)
    wq = np.asarray(params["wq"], np.float64); bq = np.asarray(params["bq"], np.float64)
    B, T, _ = x.shape
    H = whh.shape[0]

    gx = (x @ w0 + b0) @ wih + bih                           # (B, T, 3H)
    sig = lambda v: 1.0 / (1.0 + np.exp(-v))
    h = np.zeros((B, H))
    q = np.zeros((B, T))
    for t in range(T):
        gh = h @ whh + bhh
        g = gx[:, t]
        r = sig(g[:, :H] + gh[:, :H])
        z = sig(g[:, H:2 * H] + gh[:, H:2 * H])
        n = np.tanh(g[:, 2 * H:] + r * gh[:, 2 * H:])
        h = (1.0 - z) * n + z * h
        q[:, t] = h @ wq[0] + bq[0, 0]

    scores = np.zeros((B,))
    for i in range(B):
        L = int(input_length[i])
        qi = q[i, :L]
        qpad = np.concatenate([np.full(TAU - 1, np.inf), qi])
        l = np.array([qpad[k:k + TAU].min() for k in range(L)])
        e = np.concatenate([np.exp(-qi), np.zeros(TAU - 1)])
        qe = np.concatenate([qi * np.exp(-qi), np.zeros(TAU - 1)])
        m = np.array([qe[k:k + TAU].sum() / e[k:k + TAU].sum() for k in range(L)])
        scores[i] = float((BETA * m + (1.0 - BETA) * l).mean())
    return scores


if __name__ == "__main__":
    B, T = 2, 24
    INPUT_SIZE, REDUCED_SIZE, HIDDEN_SIZE = 64, 32, 32       # small analogue of (3072, 128, 32)

    root = jax.random.PRNGKey(0)
    k_x, k_p = jax.random.split(root)
    x = jax.random.normal(k_x, (B, T, INPUT_SIZE), jnp.float32)
    input_length = jnp.array([float(T), 17.0], jnp.float32)
    params = init_params(k_p, INPUT_SIZE, REDUCED_SIZE, HIDDEN_SIZE)

    score = i3d_resnet_vqa_forward(x, input_length, params)
    jax.block_until_ready(score)
    assert score.shape == (B,) and score.dtype == jnp.float32

    ref = _reference_forward(np.asarray(x), np.asarray(input_length), params)
    np.testing.assert_allclose(np.asarray(score), ref, rtol=5e-2, atol=5e-3)
    print("KERNEL_OK")
</pallas_src>

<mosaic_0001>
module attributes {stable_mosaic.version = 11 : i64} {
  func.func @_fc_gx_kernel(%arg0: i32, %arg1: memref<48x64xf32, #tpu.memory_space<vmem>>, %arg2: memref<64x128xbf16, #tpu.memory_space<vmem>>, %arg3: memref<1x128xf32, #tpu.memory_space<vmem>>, %arg4: memref<48x128xf32, #tpu.memory_space<vmem>>) attributes {dimension_semantics = [#tpu.dimension_semantics<parallel>], iteration_bounds = array<i64: 1>, scalar_prefetch = 0 : i64, scratch_operands = 0 : i64, tpu.core_type = #tpu.core_type<tc>, window_params = [{transform_indices = @transform_0, window_bounds = array<i64: 48, 64>}, {pipeline_mode = #tpu.pipeline_mode<synchronous>, transform_indices = @transform_1, window_bounds = array<i64: 64, 128>}, {pipeline_mode = #tpu.pipeline_mode<synchronous>, transform_indices = @transform_2, window_bounds = array<i64: 1, 128>}, {transform_indices = @transform_3, window_bounds = array<i64: 48, 128>}]} {
    %c0 = arith.constant 0 : index
    %c0_0 = arith.constant 0 : index
    %0 = vector.load %arg1[%c0, %c0_0] : memref<48x64xf32, #tpu.memory_space<vmem>>, vector<48x64xf32>
    %1 = arith.truncf %0 : vector<48x64xf32> to vector<48x64xbf16>
    %c0_1 = arith.constant 0 : index
    %c0_2 = arith.constant 0 : index
    %2 = vector.load %arg2[%c0_1, %c0_2] : memref<64x128xbf16, #tpu.memory_space<vmem>>, vector<64x128xbf16>
    %cst = arith.constant dense<0.000000e+00> : vector<48x128xf32>
    %3 = tpu.matmul %1, %2, %cst {dimension_numbers = #tpu.dot_dimension_numbers<[1], [0], [0], [1], [0, 0, 1, 1], [], []>} : vector<48x64xbf16>, vector<64x128xbf16>, vector<48x128xf32> -> vector<48x128xf32>
    %c0_3 = arith.constant 0 : index
    %c0_4 = arith.constant 0 : index
    %4 = vector.load %arg3[%c0_3, %c0_4] : memref<1x128xf32, #tpu.memory_space<vmem>>, vector<1x128xf32>
    %5 = vector.broadcast %4 : vector<1x128xf32> to vector<48x128xf32>
    %6 = arith.addf %3, %5 : vector<48x128xf32>
    %c0_5 = arith.constant 0 : index
    %c0_6 = arith.constant 0 : index
    %7 = vector.load %arg4[%c0_5, %c0_6] : memref<48x128xf32, #tpu.memory_space<vmem>>, vector<48x128xf32>
    tpu.vector_store %arg4[%c0_5, %c0_6], %6 {strides = array<i32>} : memref<48x128xf32, #tpu.memory_space<vmem>>, vector<48x128xf32>,
    return
  }
  func.func @transform_0(%arg0: i32) -> (i32, i32) {
    %c0_i32 = arith.constant 0 : i32
    %c0_i32_0 = arith.constant 0 : i32
    return %arg0, %c0_i32 : i32, i32
  }
  func.func @transform_1(%arg0: i32) -> (i32, i32) {
    %c0_i32 = arith.constant 0 : i32
    %c0_i32_0 = arith.constant 0 : i32
    %c0_i32_1 = arith.constant 0 : i32
    return %c0_i32, %c0_i32_0 : i32, i32
  }
  func.func @transform_2(%arg0: i32) -> (i32, i32) {
    %c0_i32 = arith.constant 0 : i32
    %c0_i32_0 = arith.constant 0 : i32
    %c0_i32_1 = arith.constant 0 : i32
    return %c0_i32, %c0_i32_0 : i32, i32
  }
  func.func @transform_3(%arg0: i32) -> (i32, i32) {
    %c0_i32 = arith.constant 0 : i32
    %c0_i32_0 = arith.constant 0 : i32
    return %arg0, %c0_i32 : i32, i32
  }
}

module attributes {stable_mosaic.version = 11 : i64} {
  func.func @_gru_pool_kernel(%arg0: i32, %arg1: memref<24x2x32xf32, #tpu.memory_space<vmem>>, %arg2: memref<24x2x32xf32, #tpu.memory_space<vmem>>, %arg3: memref<24x2x32xf32, #tpu.memory_space<vmem>>, %arg4: memref<32x96xbf16, #tpu.memory_space<vmem>>, %arg5: memref<1x96xf32, #tpu.memory_space<vmem>>, %arg6: memref<1x32xf32, #tpu.memory_space<vmem>>, %arg7: memref<1x1xf32, #tpu.memory_space<vmem>>, %arg8: memref<2x1xi32, #tpu.memory_space<vmem>>, %arg9: memref<2x1xf32, #tpu.memory_space<vmem>>, %arg10: memref<56x2xf32, #tpu.memory_space<vmem>>) attributes {dimension_semantics = [#tpu.dimension_semantics<parallel>], iteration_bounds = array<i64: 1>, scalar_prefetch = 0 : i64, scratch_operands = 1 : i64, tpu.core_type = #tpu.core_type<tc>, window_params = [{transform_indices = @transform_0, window_bounds = array<i64: 24, 2, 32>}, {transform_indices = @transform_1, window_bounds = array<i64: 24, 2, 32>}, {transform_indices = @transform_2, window_bounds = array<i64: 24, 2, 32>}, {pipeline_mode = #tpu.pipeline_mode<synchronous>, transform_indices = @transform_3, window_bounds = array<i64: 32, 96>}, {pipeline_mode = #tpu.pipeline_mode<synchronous>, transform_indices = @transform_4, window_bounds = array<i64: 1, 96>}, {pipeline_mode = #tpu.pipeline_mode<synchronous>, transform_indices = @transform_5, window_bounds = array<i64: 1, 32>}, {pipeline_mode = #tpu.pipeline_mode<synchronous>, transform_indices = @transform_6, window_bounds = array<i64: 1, 1>}, {transform_indices = @transform_7, window_bounds = array<i64: 2, 1>}, {transform_indices = @transform_8, window_bounds = array<i64: 2, 1>}]} {
    %c0 = arith.constant 0 : index
    %c0_0 = arith.constant 0 : index
    %0 = vector.load %arg4[%c0, %c0_0] : memref<32x96xbf16, #tpu.memory_space<vmem>>, vector<32x96xbf16>
    %1 = vector.extract_strided_slice %0 {offsets = [0, 0], sizes = [32, 32], strides = [1, 1]} : vector<32x96xbf16> to vector<32x32xbf16>
    %2 = vector.extract_strided_slice %0 {offsets = [0, 32], sizes = [32, 32], strides = [1, 1]} : vector<32x96xbf16> to vector<32x32xbf16>
    %3 = vector.extract_strided_slice %0 {offsets = [0, 64], sizes = [32, 32], strides = [1, 1]} : vector<32x96xbf16> to vector<32x32xbf16>
    %c0_1 = arith.constant 0 : index
    %c0_2 = arith.constant 0 : index
    %4 = vector.load %arg5[%c0_1, %c0_2] : memref<1x96xf32, #tpu.memory_space<vmem>>, vector<1x96xf32>
    %5 = vector.extract_strided_slice %4 {offsets = [0, 0], sizes = [1, 32], strides = [1, 1]} : vector<1x96xf32> to vector<1x32xf32>
    %6 = vector.extract_strided_slice %4 {offsets = [0, 32], sizes = [1, 32], strides = [1, 1]} : vector<1x96xf32> to vector<1x32xf32>
    %7 = vector.extract_strided_slice %4 {offsets = [0, 64], sizes = [1, 32], strides = [1, 1]} : vector<1x96xf32> to vector<1x32xf32>
    %c0_3 = arith.constant 0 : index
    %c0_4 = arith.constant 0 : index
    %8 = vector.load %arg6[%c0_3, %c0_4] : memref<1x32xf32, #tpu.memory_space<vmem>>, vector<1x32xf32>
    %c0_5 = arith.constant 0 : index
    %c0_6 = arith.constant 0 : index
    %9 = vector.load %arg7[%c0_5, %c0_6] : memref<1x1xf32, #tpu.memory_space<vmem>>, vector<1x1xf32>
    %10 = vector.extract %9[0, 0] : f32 from vector<1x1xf32>
    %cst = arith.constant 0x7F800000 : f32
    %11 = vector.broadcast %cst : f32 to vector<56x2xf32>
    %c0_7 = arith.constant 0 : index
    %c0_8 = arith.constant 0 : index
    %12 = vector.load %arg10[%c0_7, %c0_8] : memref<56x2xf32, #tpu.memory_space<vmem>>, vector<56x2xf32>
    tpu.vector_store %arg10[%c0_7, %c0_8], %11 {strides = array<i32>} : memref<56x2xf32, #tpu.memory_space<vmem>>, vector<56x2xf32>,
    %cst_9 = arith.constant 0.000000e+00 : f32
    %13 = vector.broadcast %cst_9 : f32 to vector<2x32xf32>
    %14 = tpu.iota {dimensions = array<i32: 0>} : vector<8x2xi32>
    %c0_i32 = arith.constant 0 : i32
    %c3_i32 = arith.constant 3 : i32
    %15 = arith.addi %c0_i32, %c3_i32 : i32
    %c1_i32 = arith.constant 1 : i32
    %16 = scf.for %arg11 = %c0_i32 to %15 step %c1_i32 iter_args(%arg12 = %13) -> (vector<2x32xf32>)  : i32 {
      %c8_i32 = arith.constant 8 : i32
      %127 = arith.muli %arg11, %c8_i32 : i32
      %cst_26 = arith.constant 0.000000e+00 : f32
      %128 = vector.broadcast %cst_26 : f32 to vector<8x2xf32>
      %c0_i32_27 = arith.constant 0 : i32
      %129 = arith.addi %127, %c0_i32_27 : i32
      %130 = arith.truncf %arg12 : vector<2x32xf32> to vector<2x32xbf16>
      %cst_28 = arith.constant dense<0.000000e+00> : vector<2x32xf32>
      %131 = tpu.matmul %130, %1, %cst_28 {dimension_numbers = #tpu.dot_dimension_numbers<[1], [0], [0], [1], [0, 0, 1, 1], [], []>} : vector<2x32xbf16>, vector<32x32xbf16>, vector<2x32xf32> -> vector<2x32xf32>
      %132 = vector.broadcast %5 : vector<1x32xf32> to vector<2x32xf32>
      %133 = arith.addf %131, %132 : vector<2x32xf32>
      %cst_29 = arith.constant dense<0.000000e+00> : vector<2x32xf32>
      %134 = tpu.matmul %130, %2, %cst_29 {dimension_numbers = #tpu.dot_dimension_numbers<[1], [0], [0], [1], [0, 0, 1, 1], [], []>} : vector<2x32xbf16>, vector<32x32xbf16>, vector<2x32xf32> -> vector<2x32xf32>
      %135 = vector.broadcast %6 : vector<1x32xf32> to vector<2x32xf32>
      %136 = arith.addf %134, %135 : vector<2x32xf32>
      %cst_30 = arith.constant dense<0.000000e+00> : vector<2x32xf32>
      %137 = tpu.matmul %130, %3, %cst_30 {dimension_numbers = #tpu.dot_dimension_numbers<[1], [0], [0], [1], [0, 0, 1, 1], [], []>} : vector<2x32xbf16>, vector<32x32xbf16>, vector<2x32xf32> -> vector<2x32xf32>
      %138 = vector.broadcast %7 : vector<1x32xf32> to vector<2x32xf32>
      %139 = arith.addf %137, %138 : vector<2x32xf32>
      %140 = arith.index_cast %129 : i32 to index
      %c0_31 = arith.constant 0 : index
      %c0_32 = arith.constant 0 : index
      %141 = vector.load %arg1[%140, %c0_31, %c0_32] : memref<24x2x32xf32, #tpu.memory_space<vmem>>, vector<1x2x32xf32>
      %142 = vector.shape_cast %141 : vector<1x2x32xf32> to vector<2x32xf32>
      %143 = arith.addf %142, %133 : vector<2x32xf32>
      %144 = arith.negf %143 : vector<2x32xf32>
      %145 = math.exp %144 : vector<2x32xf32>
      %cst_33 = arith.constant 1.000000e+00 : f32
      %146 = vector.broadcast %cst_33 : f32 to vector<2x32xf32>
      %147 = arith.addf %146, %145 : vector<2x32xf32>
      %148 = arith.divf %146, %147 : vector<2x32xf32>
      %149 = arith.index_cast %129 : i32 to index
      %c0_34 = arith.constant 0 : index
      %c0_35 = arith.constant 0 : index
      %150 = vector.load %arg2[%149, %c0_34, %c0_35] : memref<24x2x32xf32, #tpu.memory_space<vmem>>, vector<1x2x32xf32>
      %151 = vector.shape_cast %150 : vector<1x2x32xf32> to vector<2x32xf32>
      %152 = arith.addf %151, %136 : vector<2x32xf32>
      %153 = arith.negf %152 : vector<2x32xf32>
      %154 = math.exp %153 : vector<2x32xf32>
      %cst_36 = arith.constant 1.000000e+00 : f32
      %155 = vector.broadcast %cst_36 : f32 to vector<2x32xf32>
      %156 = arith.addf %155, %154 : vector<2x32xf32>
      %157 = arith.divf %155, %156 : vector<2x32xf32>
      %158 = arith.index_cast %129 : i32 to index
      %c0_37 = arith.constant 0 : index
      %c0_38 = arith.constant 0 : index
      %159 = vector.load %arg3[%158, %c0_37, %c0_38] : memref<24x2x32xf32, #tpu.memory_space<vmem>>, vector<1x2x32xf32>
      %160 = vector.shape_cast %159 : vector<1x2x32xf32> to vector<2x32xf32>
      %161 = arith.mulf %148, %139 : vector<2x32xf32>
      %162 = arith.addf %160, %161 : vector<2x32xf32>
      %163 = math.tanh %162 : vector<2x32xf32>
      %cst_39 = arith.constant 1.000000e+00 : f32
      %164 = vector.broadcast %cst_39 : f32 to vector<2x32xf32>
      %165 = arith.subf %164, %157 : vector<2x32xf32>
      %166 = arith.mulf %165, %163 : vector<2x32xf32>
      %167 = arith.mulf %157, %arg12 : vector<2x32xf32>
      %168 = arith.addf %166, %167 : vector<2x32xf32>
      %169 = vector.broadcast %8 : vector<1x32xf32> to vector<2x32xf32>
      %170 = arith.mulf %168, %169 : vector<2x32xf32>
      %cst_40 = arith.constant dense<0.000000e+00> : vector<2xf32>
      %171 = vector.multi_reduction <add>, %170, %cst_40 [1] : vector<2x32xf32> to vector<2xf32>
      %172 = vector.broadcast %10 : f32 to vector<2xf32>
      %173 = arith.addf %171, %172 : vector<2xf32>
      %c0_i32_41 = arith.constant 0 : i32
      %174 = vector.broadcast %c0_i32_41 : i32 to vector<8x2xi32>
      %175 = arith.cmpi eq, %14, %174 : vector<8x2xi32>
      %176 = vector.shape_cast %173 : vector<2xf32> to vector<1x2xf32>
      %177 = vector.shape_cast %176 : vector<1x2xf32> to vector<1x2xf32>
      %178 = vector.broadcast %177 : vector<1x2xf32> to vector<8x2xf32>
      %179 = arith.select %175, %178, %128 : vector<8x2xi1>, vector<8x2xf32>
      %c1_i32_42 = arith.constant 1 : i32
      %180 = arith.addi %127, %c1_i32_42 : i32
      %181 = arith.truncf %168 : vector<2x32xf32> to vector<2x32xbf16>
      %cst_43 = arith.constant dense<0.000000e+00> : vector<2x32xf32>
      %182 = tpu.matmul %181, %1, %cst_43 {dimension_numbers = #tpu.dot_dimension_numbers<[1], [0], [0], [1], [0, 0, 1, 1], [], []>} : vector<2x32xbf16>, vector<32x32xbf16>, vector<2x32xf32> -> vector<2x32xf32>
      %183 = vector.broadcast %5 : vector<1x32xf32> to vector<2x32xf32>
      %184 = arith.addf %182, %183 : vector<2x32xf32>
      %cst_44 = arith.constant dense<0.000000e+00> : vector<2x32xf32>
      %185 = tpu.matmul %181, %2, %cst_44 {dimension_numbers = #tpu.dot_dimension_numbers<[1], [0], [0], [1], [0, 0, 1, 1], [], []>} : vector<2x32xbf16>, vector<32x32xbf16>, vector<2x32xf32> -> vector<2x32xf32>
      %186 = vector.broadcast %6 : vector<1x32xf32> to vector<2x32xf32>
      %187 = arith.addf %185, %186 : vector<2x32xf32>
      %cst_45 = arith.constant dense<0.000000e+00> : vector<2x32xf32>
      %188 = tpu.matmul %181, %3, %cst_45 {dimension_numbers = #tpu.dot_dimension_numbers<[1], [0], [0], [1], [0, 0, 1, 1], [], []>} : vector<2x32xbf16>, vector<32x32xbf16>, vector<2x32xf32> -> vector<2x32xf32>
      %189 = vector.broadcast %7 : vector<1x32xf32> to vector<2x32xf32>
      %190 = arith.addf %188, %189 : vector<2x32xf32>
      %191 = arith.index_cast %180 : i32 to index
      %c0_46 = arith.constant 0 : index
      %c0_47 = arith.constant 0 : index
      %192 = vector.load %arg1[%191, %c0_46, %c0_47] : memref<24x2x32xf32, #tpu.memory_space<vmem>>, vector<1x2x32xf32>
      %193 = vector.shape_cast %192 : vector<1x2x32xf32> to vector<2x32xf32>
      %194 = arith.addf %193, %184 : vector<2x32xf32>
      %195 = arith.negf %194 : vector<2x32xf32>
      %196 = math.exp %195 : vector<2x32xf32>
      %cst_48 = arith.constant 1.000000e+00 : f32
      %197 = vector.broadcast %cst_48 : f32 to vector<2x32xf32>
      %198 = arith.addf %197, %196 : vector<2x32xf32>
      %199 = arith.divf %197, %198 : vector<2x32xf32>
      %200 = arith.index_cast %180 : i32 to index
      %c0_49 = arith.constant 0 : index
      %c0_50 = arith.constant 0 : index
      %201 = vector.load %arg2[%200, %c0_49, %c0_50] : memref<24x2x32xf32, #tpu.memory_space<vmem>>, vector<1x2x32xf32>
      %202 = vector.shape_cast %201 : vector<1x2x32xf32> to vector<2x32xf32>
      %203 = arith.addf %202, %187 : vector<2x32xf32>
      %204 = arith.negf %203 : vector<2x32xf32>
      %205 = math.exp %204 : vector<2x32xf32>
      %cst_51 = arith.constant 1.000000e+00 : f32
      %206 = vector.broadcast %cst_51 : f32 to vector<2x32xf32>
      %207 = arith.addf %206, %205 : vector<2x32xf32>
      %208 = arith.divf %206, %207 : vector<2x32xf32>
      %209 = arith.index_cast %180 : i32 to index
      %c0_52 = arith.constant 0 : index
      %c0_53 = arith.constant 0 : index
      %210 = vector.load %arg3[%209, %c0_52, %c0_53] : memref<24x2x32xf32, #tpu.memory_space<vmem>>, vector<1x2x32xf32>
      %211 = vector.shape_cast %210 : vector<1x2x32xf32> to vector<2x32xf32>
      %212 = arith.mulf %199, %190 : vector<2x32xf32>
      %213 = arith.addf %211, %212 : vector<2x32xf32>
      %214 = math.tanh %213 : vector<2x32xf32>
      %cst_54 = arith.constant 1.000000e+00 : f32
      %215 = vector.broadcast %cst_54 : f32 to vector<2x32xf32>
      %216 = arith.subf %215, %208 : vector<2x32xf32>
      %217 = arith.mulf %216, %214 : vector<2x32xf32>
      %218 = arith.mulf %208, %168 : vector<2x32xf32>
      %219 = arith.addf %217, %218 : vector<2x32xf32>
      %220 = vector.broadcast %8 : vector<1x32xf32> to vector<2x32xf32>
      %221 = arith.mulf %219, %220 : vector<2x32xf32>
      %cst_55 = arith.constant dense<0.000000e+00> : vector<2xf32>
      %222 = vector.multi_reduction <add>, %221, %cst_55 [1] : vector<2x32xf32> to vector<2xf32>
      %223 = vector.broadcast %10 : f32 to vector<2xf32>
      %224 = arith.addf %222, %223 : vector<2xf32>
      %c1_i32_56 = arith.constant 1 : i32
      %225 = vector.broadcast %c1_i32_56 : i32 to vector<8x2xi32>
      %226 = arith.cmpi eq, %14, %225 : vector<8x2xi32>
      %227 = vector.shape_cast %224 : vector<2xf32> to vector<1x2xf32>
      %228 = vector.shape_cast %227 : vector<1x2xf32> to vector<1x2xf32>
      %229 = vector.broadcast %228 : vector<1x2xf32> to vector<8x2xf32>
      %230 = arith.select %226, %229, %179 : vector<8x2xi1>, vector<8x2xf32>
      %c2_i32 = arith.constant 2 : i32
      %231 = arith.addi %127, %c2_i32 : i32
      %232 = arith.truncf %219 : vector<2x32xf32> to vector<2x32xbf16>
      %cst_57 = arith.constant dense<0.000000e+00> : vector<2x32xf32>
      %233 = tpu.matmul %232, %1, %cst_57 {dimension_numbers = #tpu.dot_dimension_numbers<[1], [0], [0], [1], [0, 0, 1, 1], [], []>} : vector<2x32xbf16>, vector<32x32xbf16>, vector<2x32xf32> -> vector<2x32xf32>
      %234 = vector.broadcast %5 : vector<1x32xf32> to vector<2x32xf32>
      %235 = arith.addf %233, %234 : vector<2x32xf32>
      %cst_58 = arith.constant dense<0.000000e+00> : vector<2x32xf32>
      %236 = tpu.matmul %232, %2, %cst_58 {dimension_numbers = #tpu.dot_dimension_numbers<[1], [0], [0], [1], [0, 0, 1, 1], [], []>} : vector<2x32xbf16>, vector<32x32xbf16>, vector<2x32xf32> -> vector<2x32xf32>
      %237 = vector.broadcast %6 : vector<1x32xf32> to vector<2x32xf32>
      %238 = arith.addf %236, %237 : vector<2x32xf32>
      %cst_59 = arith.constant dense<0.000000e+00> : vector<2x32xf32>
      %239 = tpu.matmul %232, %3, %cst_59 {dimension_numbers = #tpu.dot_dimension_numbers<[1], [0], [0], [1], [0, 0, 1, 1], [], []>} : vector<2x32xbf16>, vector<32x32xbf16>, vector<2x32xf32> -> vector<2x32xf32>
      %240 = vector.broadcast %7 : vector<1x32xf32> to vector<2x32xf32>
      %241 = arith.addf %239, %240 : vector<2x32xf32>
      %242 = arith.index_cast %231 : i32 to index
      %c0_60 = arith.constant 0 : index
      %c0_61 = arith.constant 0 : index
      %243 = vector.load %arg1[%242, %c0_60, %c0_61] : memref<24x2x32xf32, #tpu.memory_space<vmem>>, vector<1x2x32xf32>
      %244 = vector.shape_cast %243 : vector<1x2x32xf32> to vector<2x32xf32>
      %245 = arith.addf %244, %235 : vector<2x32xf32>
      %246 = arith.negf %245 : vector<2x32xf32>
      %247 = math.exp %246 : vector<2x32xf32>
      %cst_62 = arith.constant 1.000000e+00 : f32
      %248 = vector.broadcast %cst_62 : f32 to vector<2x32xf32>
      %249 = arith.addf %248, %247 : vector<2x32xf32>
      %250 = arith.divf %248, %249 : vector<2x32xf32>
      %251 = arith.index_cast %231 : i32 to index
      %c0_63 = arith.constant 0 : index
      %c0_64 = arith.constant 0 : index
      %252 = vector.load %arg2[%251, %c0_63, %c0_64] : memref<24x2x32xf32, #tpu.memory_space<vmem>>, vector<1x2x32xf32>
      %253 = vector.shape_cast %252 : vector<1x2x32xf32> to vector<2x32xf32>
      %254 = arith.addf %253, %238 : vector<2x32xf32>
      %255 = arith.negf %254 : vector<2x32xf32>
      %256 = math.exp %255 : vector<2x32xf32>
      %cst_65 = arith.constant 1.000000e+00 : f32
      %257 = vector.broadcast %cst_65 : f32 to vector<2x32xf32>
      %258 = arith.addf %257, %256 : vector<2x32xf32>
      %259 = arith.divf %257, %258 : vector<2x32xf32>
      %260 = arith.index_cast %231 : i32 to index
      %c0_66 = arith.constant 0 : index
      %c0_67 = arith.constant 0 : index
      %261 = vector.load %arg3[%260, %c0_66, %c0_67] : memref<24x2x32xf32, #tpu.memory_space<vmem>>, vector<1x2x32xf32>
      %262 = vector.shape_cast %261 : vector<1x2x32xf32> to vector<2x32xf32>
      %263 = arith.mulf %250, %241 : vector<2x32xf32>
      %264 = arith.addf %262, %263 : vector<2x32xf32>
      %265 = math.tanh %264 : vector<2x32xf32>
      %cst_68 = arith.constant 1.000000e+00 : f32
      %266 = vector.broadcast %cst_68 : f32 to vector<2x32xf32>
      %267 = arith.subf %266, %259 : vector<2x32xf32>
      %268 = arith.mulf %267, %265 : vector<2x32xf32>
      %269 = arith.mulf %259, %219 : vector<2x32xf32>
      %270 = arith.addf %268, %269 : vector<2x32xf32>
      %271 = vector.broadcast %8 : vector<1x32xf32> to vector<2x32xf32>
      %272 = arith.mulf %270, %271 : vector<2x32xf32>
      %cst_69 = arith.constant dense<0.000000e+00> : vector<2xf32>
      %273 = vector.multi_reduction <add>, %272, %cst_69 [1] : vector<2x32xf32> to vector<2xf32>
      %274 = vector.broadcast %10 : f32 to vector<2xf32>
      %275 = arith.addf %273, %274 : vector<2xf32>
      %c2_i32_70 = arith.constant 2 : i32
      %276 = vector.broadcast %c2_i32_70 : i32 to vector<8x2xi32>
      %277 = arith.cmpi eq, %14, %276 : vector<8x2xi32>
      %278 = vector.shape_cast %275 : vector<2xf32> to vector<1x2xf32>
      %279 = vector.shape_cast %278 : vector<1x2xf32> to vector<1x2xf32>
      %280 = vector.broadcast %279 : vector<1x2xf32> to vector<8x2xf32>
      %281 = arith.select %277, %280, %230 : vector<8x2xi1>, vector<8x2xf32>
      %c3_i32_71 = arith.constant 3 : i32
      %282 = arith.addi %127, %c3_i32_71 : i32
      %283 = arith.truncf %270 : vector<2x32xf32> to vector<2x32xbf16>
      %cst_72 = arith.constant dense<0.000000e+00> : vector<2x32xf32>
      %284 = tpu.matmul %283, %1, %cst_72 {dimension_numbers = #tpu.dot_dimension_numbers<[1], [0], [0], [1], [0, 0, 1, 1], [], []>} : vector<2x32xbf16>, vector<32x32xbf16>, vector<2x32xf32> -> vector<2x32xf32>
      %285 = vector.broadcast %5 : vector<1x32xf32> to vector<2x32xf32>
      %286 = arith.addf %284, %285 : vector<2x32xf32>
      %cst_73 = arith.constant dense<0.000000e+00> : vector<2x32xf32>
      %287 = tpu.matmul %283, %2, %cst_73 {dimension_numbers = #tpu.dot_dimension_numbers<[1], [0], [0], [1], [0, 0, 1, 1], [], []>} : vector<2x32xbf16>, vector<32x32xbf16>, vector<2x32xf32> -> vector<2x32xf32>
      %288 = vector.broadcast %6 : vector<1x32xf32> to vector<2x32xf32>
      %289 = arith.addf %287, %288 : vector<2x32xf32>
      %cst_74 = arith.constant dense<0.000000e+00> : vector<2x32xf32>
      %290 = tpu.matmul %283, %3, %cst_74 {dimension_numbers = #tpu.dot_dimension_numbers<[1], [0], [0], [1], [0, 0, 1, 1], [], []>} : vector<2x32xbf16>, vector<32x32xbf16>, vector<2x32xf32> -> vector<2x32xf32>
      %291 = vector.broadcast %7 : vector<1x32xf32> to vector<2x32xf32>
      %292 = arith.addf %290, %291 : vector<2x32xf32>
      %293 = arith.index_cast %282 : i32 to index
      %c0_75 = arith.constant 0 : index
      %c0_76 = arith.constant 0 : index
      %294 = vector.load %arg1[%293, %c0_75, %c0_76] : memref<24x2x32xf32, #tpu.memory_space<vmem>>, vector<1x2x32xf32>
      %295 = vector.shape_cast %294 : vector<1x2x32xf32> to vector<2x32xf32>
      %296 = arith.addf %295, %286 : vector<2x32xf32>
      %297 = arith.negf %296 : vector<2x32xf32>
      %298 = math.exp %297 : vector<2x32xf32>
      %cst_77 = arith.constant 1.000000e+00 : f32
      %299 = vector.broadcast %cst_77 : f32 to vector<2x32xf32>
      %300 = arith.addf %299, %298 : vector<2x32xf32>
      %301 = arith.divf %299, %300 : vector<2x32xf32>
      %302 = arith.index_cast %282 : i32 to index
      %c0_78 = arith.constant 0 : index
      %c0_79 = arith.constant 0 : index
      %303 = vector.load %arg2[%302, %c0_78, %c0_79] : memref<24x2x32xf32, #tpu.memory_space<vmem>>, vector<1x2x32xf32>
      %304 = vector.shape_cast %303 : vector<1x2x32xf32> to vector<2x32xf32>
      %305 = arith.addf %304, %289 : vector<2x32xf32>
      %306 = arith.negf %305 : vector<2x32xf32>
      %307 = math.exp %306 : vector<2x32xf32>
      %cst_80 = arith.constant 1.000000e+00 : f32
      %308 = vector.broadcast %cst_80 : f32 to vector<2x32xf32>
      %309 = arith.addf %308, %307 : vector<2x32xf32>
      %310 = arith.divf %308, %309 : vector<2x32xf32>
      %311 = arith.index_cast %282 : i32 to index
      %c0_81 = arith.constant 0 : index
      %c0_82 = arith.constant 0 : index
      %312 = vector.load %arg3[%311, %c0_81, %c0_82] : memref<24x2x32xf32, #tpu.memory_space<vmem>>, vector<1x2x32xf32>
      %313 = vector.shape_cast %312 : vector<1x2x32xf32> to vector<2x32xf32>
      %314 = arith.mulf %301, %292 : vector<2x32xf32>
      %315 = arith.addf %313, %314 : vector<2x32xf32>
      %316 = math.tanh %315 : vector<2x32xf32>
      %cst_83 = arith.constant 1.000000e+00 : f32
      %317 = vector.broadcast %cst_83 : f32 to vector<2x32xf32>
      %318 = arith.subf %317, %310 : vector<2x32xf32>
      %319 = arith.mulf %318, %316 : vector<2x32xf32>
      %320 = arith.mulf %310, %270 : vector<2x32xf32>
      %321 = arith.addf %319, %320 : vector<2x32xf32>
      %322 = vector.broadcast %8 : vector<1x32xf32> to vector<2x32xf32>
      %323 = arith.mulf %321, %322 : vector<2x32xf32>
      %cst_84 = arith.constant dense<0.000000e+00> : vector<2xf32>
      %324 = vector.multi_reduction <add>, %323, %cst_84 [1] : vector<2x32xf32> to vector<2xf32>
      %325 = vector.broadcast %10 : f32 to vector<2xf32>
      %326 = arith.addf %324, %325 : vector<2xf32>
      %c3_i32_85 = arith.constant 3 : i32
      %327 = vector.broadcast %c3_i32_85 : i32 to vector<8x2xi32>
      %328 = arith.cmpi eq, %14, %327 : vector<8x2xi32>
      %329 = vector.shape_cast %326 : vector<2xf32> to vector<1x2xf32>
      %330 = vector.shape_cast %329 : vector<1x2xf32> to vector<1x2xf32>
      %331 = vector.broadcast %330 : vector<1x2xf32> to vector<8x2xf32>
      %332 = arith.select %328, %331, %281 : vector<8x2xi1>, vector<8x2xf32>
      %c4_i32 = arith.constant 4 : i32
      %333 = arith.addi %127, %c4_i32 : i32
      %334 = arith.truncf %321 : vector<2x32xf32> to vector<2x32xbf16>
      %cst_86 = arith.constant dense<0.000000e+00> : vector<2x32xf32>
      %335 = tpu.matmul %334, %1, %cst_86 {dimension_numbers = #tpu.dot_dimension_numbers<[1], [0], [0], [1], [0, 0, 1, 1], [], []>} : vector<2x32xbf16>, vector<32x32xbf16>, vector<2x32xf32> -> vector<2x32xf32>
      %336 = vector.broadcast %5 : vector<1x32xf32> to vector<2x32xf32>
      %337 = arith.addf %335, %336 : vector<2x32xf32>
      %cst_87 = arith.constant dense<0.000000e+00> : vector<2x32xf32>
      %338 = tpu.matmul %334, %2, %cst_87 {dimension_numbers = #tpu.dot_dimension_numbers<[1], [0], [0], [1], [0, 0, 1, 1], [], []>} : vector<2x32xbf16>, vector<32x32xbf16>, vector<2x32xf32> -> vector<2x32xf32>
      %339 = vector.broadcast %6 : vector<1x32xf32> to vector<2x32xf32>
      %340 = arith.addf %338, %339 : vector<2x32xf32>
      %cst_88 = arith.constant dense<0.000000e+00> : vector<2x32xf32>
      %341 = tpu.matmul %334, %3, %cst_88 {dimension_numbers = #tpu.dot_dimension_numbers<[1], [0], [0], [1], [0, 0, 1, 1], [], []>} : vector<2x32xbf16>, vector<32x32xbf16>, vector<2x32xf32> -> vector<2x32xf32>
      %342 = vector.broadcast %7 : vector<1x32xf32> to vector<2x32xf32>
      %343 = arith.addf %341, %342 : vector<2x32xf32>
      %344 = arith.index_cast %333 : i32 to index
      %c0_89 = arith.constant 0 : index
      %c0_90 = arith.constant 0 : index
      %345 = vector.load %arg1[%344, %c0_89, %c0_90] : memref<24x2x32xf32, #tpu.memory_space<vmem>>, vector<1x2x32xf32>
      %346 = vector.shape_cast %345 : vector<1x2x32xf32> to vector<2x32xf32>
      %347 = arith.addf %346, %337 : vector<2x32xf32>
      %348 = arith.negf %347 : vector<2x32xf32>
      %349 = math.exp %348 : vector<2x32xf32>
      %cst_91 = arith.constant 1.000000e+00 : f32
      %350 = vector.broadcast %cst_91 : f32 to vector<2x32xf32>
      %351 = arith.addf %350, %349 : vector<2x32xf32>
      %352 = arith.divf %350, %351 : vector<2x32xf32>
      %353 = arith.index_cast %333 : i32 to index
      %c0_92 = arith.constant 0 : index
      %c0_93 = arith.constant 0 : index
      %354 = vector.load %arg2[%353, %c0_92, %c0_93] : memref<24x2x32xf32, #tpu.memory_space<vmem>>, vector<1x2x32xf32>
      %355 = vector.shape_cast %354 : vector<1x2x32xf32> to vector<2x32xf32>
      %356 = arith.addf %355, %340 : vector<2x32xf32>
      %357 = arith.negf %356 : vector<2x32xf32>
      %358 = math.exp %357 : vector<2x32xf32>
      %cst_94 = arith.constant 1.000000e+00 : f32
      %359 = vector.broadcast %cst_94 : f32 to vector<2x32xf32>
      %360 = arith.addf %359, %358 : vector<2x32xf32>
      %361 = arith.divf %359, %360 : vector<2x32xf32>
      %362 = arith.index_cast %333 : i32 to index
      %c0_95 = arith.constant 0 : index
      %c0_96 = arith.constant 0 : index
      %363 = vector.load %arg3[%362, %c0_95, %c0_96] : memref<24x2x32xf32, #tpu.memory_space<vmem>>, vector<1x2x32xf32>
      %364 = vector.shape_cast %363 : vector<1x2x32xf32> to vector<2x32xf32>
      %365 = arith.mulf %352, %343 : vector<2x32xf32>
      %366 = arith.addf %364, %365 : vector<2x32xf32>
      %367 = math.tanh %366 : vector<2x32xf32>
      %cst_97 = arith.constant 1.000000e+00 : f32
      %368 = vector.broadcast %cst_97 : f32 to vector<2x32xf32>
      %369 = arith.subf %368, %361 : vector<2x32xf32>
      %370 = arith.mulf %369, %367 : vector<2x32xf32>
      %371 = arith.mulf %361, %321 : vector<2x32xf32>
      %372 = arith.addf %370, %371 : vector<2x32xf32>
      %373 = vector.broadcast %8 : vector<1x32xf32> to vector<2x32xf32>
      %374 = arith.mulf %372, %373 : vector<2x32xf32>
      %cst_98 = arith.constant dense<0.000000e+00> : vector<2xf32>
      %375 = vector.multi_reduction <add>, %374, %cst_98 [1] : vector<2x32xf32> to vector<2xf32>
      %376 = vector.broadcast %10 : f32 to vector<2xf32>
      %377 = arith.addf %375, %376 : vector<2xf32>
      %c4_i32_99 = arith.constant 4 : i32
      %378 = vector.broadcast %c4_i32_99 : i32 to vector<8x2xi32>
      %379 = arith.cmpi eq, %14, %378 : vector<8x2xi32>
      %380 = vector.shape_cast %377 : vector<2xf32> to vector<1x2xf32>
      %381 = vector.shape_cast %380 : vector<1x2xf32> to vector<1x2xf32>
      %382 = vector.broadcast %381 : vector<1x2xf32> to vector<8x2xf32>
      %383 = arith.select %379, %382, %332 : vector<8x2xi1>, vector<8x2xf32>
      %c5_i32 = arith.constant 5 : i32
      %384 = arith.addi %127, %c5_i32 : i32
      %385 = arith.truncf %372 : vector<2x32xf32> to vector<2x32xbf16>
      %cst_100 = arith.constant dense<0.000000e+00> : vector<2x32xf32>
      %386 = tpu.matmul %385, %1, %cst_100 {dimension_numbers = #tpu.dot_dimension_numbers<[1], [0], [0], [1], [0, 0, 1, 1], [], []>} : vector<2x32xbf16>, vector<32x32xbf16>, vector<2x32xf32> -> vector<2x32xf32>
      %387 = vector.broadcast %5 : vector<1x32xf32> to vector<2x32xf32>
      %388 = arith.addf %386, %387 : vector<2x32xf32>
      %cst_101 = arith.constant dense<0.000000e+00> : vector<2x32xf32>
      %389 = tpu.matmul %385, %2, %cst_101 {dimension_numbers = #tpu.dot_dimension_numbers<[1], [0], [0], [1], [0, 0, 1, 1], [], []>} : vector<2x32xbf16>, vector<32x32xbf16>, vector<2x32xf32> -> vector<2x32xf32>
      %390 = vector.broadcast %6 : vector<1x32xf32> to vector<2x32xf32>
      %391 = arith.addf %389, %390 : vector<2x32xf32>
      %cst_102 = arith.constant dense<0.000000e+00> : vector<2x32xf32>
      %392 = tpu.matmul %385, %3, %cst_102 {dimension_numbers = #tpu.dot_dimension_numbers<[1], [0], [0], [1], [0, 0, 1, 1], [], []>} : vector<2x32xbf16>, vector<32x32xbf16>, vector<2x32xf32> -> vector<2x32xf32>
      %393 = vector.broadcast %7 : vector<1x32xf32> to vector<2x32xf32>
      %394 = arith.addf %392, %393 : vector<2x32xf32>
      %395 = arith.index_cast %384 : i32 to index
      %c0_103 = arith.constant 0 : index
      %c0_104 = arith.constant 0 : index
      %396 = vector.load %arg1[%395, %c0_103, %c0_104] : memref<24x2x32xf32, #tpu.memory_space<vmem>>, vector<1x2x32xf32>
      %397 = vector.shape_cast %396 : vector<1x2x32xf32> to vector<2x32xf32>
      %398 = arith.addf %397, %388 : vector<2x32xf32>
      %399 = arith.negf %398 : vector<2x32xf32>
      %400 = math.exp %399 : vector<2x32xf32>
      %cst_105 = arith.constant 1.000000e+00 : f32
      %401 = vector.broadcast %cst_105 : f32 to vector<2x32xf32>
      %402 = arith.addf %401, %400 : vector<2x32xf32>
      %403 = arith.divf %401, %402 : vector<2x32xf32>
      %404 = arith.index_cast %384 : i32 to index
      %c0_106 = arith.constant 0 : index
      %c0_107 = arith.constant 0 : index
      %405 = vector.load %arg2[%404, %c0_106, %c0_107] : memref<24x2x32xf32, #tpu.memory_space<vmem>>, vector<1x2x32xf32>
      %406 = vector.shape_cast %405 : vector<1x2x32xf32> to vector<2x32xf32>
      %407 = arith.addf %406, %391 : vector<2x32xf32>
      %408 = arith.negf %407 : vector<2x32xf32>
      %409 = math.exp %408 : vector<2x32xf32>
      %cst_108 = arith.constant 1.000000e+00 : f32
      %410 = vector.broadcast %cst_108 : f32 to vector<2x32xf32>
      %411 = arith.addf %410, %409 : vector<2x32xf32>
      %412 = arith.divf %410, %411 : vector<2x32xf32>
      %413 = arith.index_cast %384 : i32 to index
      %c0_109 = arith.constant 0 : index
      %c0_110 = arith.constant 0 : index
      %414 = vector.load %arg3[%413, %c0_109, %c0_110] : memref<24x2x32xf32, #tpu.memory_space<vmem>>, vector<1x2x32xf32>
      %415 = vector.shape_cast %414 : vector<1x2x32xf32> to vector<2x32xf32>
      %416 = arith.mulf %403, %394 : vector<2x32xf32>
      %417 = arith.addf %415, %416 : vector<2x32xf32>
      %418 = math.tanh %417 : vector<2x32xf32>
      %cst_111 = arith.constant 1.000000e+00 : f32
      %419 = vector.broadcast %cst_111 : f32 to vector<2x32xf32>
      %420 = arith.subf %419, %412 : vector<2x32xf32>
      %421 = arith.mulf %420, %418 : vector<2x32xf32>
      %422 = arith.mulf %412, %372 : vector<2x32xf32>
      %423 = arith.addf %421, %422 : vector<2x32xf32>
      %424 = vector.broadcast %8 : vector<1x32xf32> to vector<2x32xf32>
      %425 = arith.mulf %423, %424 : vector<2x32xf32>
      %cst_112 = arith.constant dense<0.000000e+00> : vector<2xf32>
      %426 = vector.multi_reduction <add>, %425, %cst_112 [1] : vector<2x32xf32> to vector<2xf32>
      %427 = vector.broadcast %10 : f32 to vector<2xf32>
      %428 = arith.addf %426, %427 : vector<2xf32>
      %c5_i32_113 = arith.constant 5 : i32
      %429 = vector.broadcast %c5_i32_113 : i32 to vector<8x2xi32>
      %430 = arith.cmpi eq, %14, %429 : vector<8x2xi32>
      %431 = vector.shape_cast %428 : vector<2xf32> to vector<1x2xf32>
      %432 = vector.shape_cast %431 : vector<1x2xf32> to vector<1x2xf32>
      %433 = vector.broadcast %432 : vector<1x2xf32> to vector<8x2xf32>
      %434 = arith.select %430, %433, %383 : vector<8x2xi1>, vector<8x2xf32>
      %c6_i32 = arith.constant 6 : i32
      %435 = arith.addi %127, %c6_i32 : i32
      %436 = arith.truncf %423 : vector<2x32xf32> to vector<2x32xbf16>
      %cst_114 = arith.constant dense<0.000000e+00> : vector<2x32xf32>
      %437 = tpu.matmul %436, %1, %cst_114 {dimension_numbers = #tpu.dot_dimension_numbers<[1], [0], [0], [1], [0, 0, 1, 1], [], []>} : vector<2x32xbf16>, vector<32x32xbf16>, vector<2x32xf32> -> vector<2x32xf32>
      %438 = vector.broadcast %5 : vector<1x32xf32> to vector<2x32xf32>
      %439 = arith.addf %437, %438 : vector<2x32xf32>
      %cst_115 = arith.constant dense<0.000000e+00> : vector<2x32xf32>
      %440 = tpu.matmul %436, %2, %cst_115 {dimension_numbers = #tpu.dot_dimension_numbers<[1], [0], [0], [1], [0, 0, 1, 1], [], []>} : vector<2x32xbf16>, vector<32x32xbf16>, vector<2x32xf32> -> vector<2x32xf32>
      %441 = vector.broadcast %6 : vector<1x32xf32> to vector<2x32xf32>
      %442 = arith.addf %440, %441 : vector<2x32xf32>
      %cst_116 = arith.constant dense<0.000000e+00> : vector<2x32xf32>
      %443 = tpu.matmul %436, %3, %cst_116 {dimension_numbers = #tpu.dot_dimension_numbers<[1], [0], [0], [1], [0, 0, 1, 1], [], []>} : vector<2x32xbf16>, vector<32x32xbf16>, vector<2x32xf32> -> vector<2x32xf32>
      %444 = vector.broadcast %7 : vector<1x32xf32> to vector<2x32xf32>
      %445 = arith.addf %443, %444 : vector<2x32xf32>
      %446 = arith.index_cast %435 : i32 to index
      %c0_117 = arith.constant 0 : index
      %c0_118 = arith.constant 0 : index
      %447 = vector.load %arg1[%446, %c0_117, %c0_118] : memref<24x2x32xf32, #tpu.memory_space<vmem>>, vector<1x2x32xf32>
      %448 = vector.shape_cast %447 : vector<1x2x32xf32> to vector<2x32xf32>
      %449 = arith.addf %448, %439 : vector<2x32xf32>
      %450 = arith.negf %449 : vector<2x32xf32>
      %451 = math.exp %450 : vector<2x32xf32>
      %cst_119 = arith.constant 1.000000e+00 : f32
      %452 = vector.broadcast %cst_119 : f32 to vector<2x32xf32>
      %453 = arith.addf %452, %451 : vector<2x32xf32>
      %454 = arith.divf %452, %453 : vector<2x32xf32>
      %455 = arith.index_cast %435 : i32 to index
      %c0_120 = arith.constant 0 : index
      %c0_121 = arith.constant 0 : index
      %456 = vector.load %arg2[%455, %c0_120, %c0_121] : memref<24x2x32xf32, #tpu.memory_space<vmem>>, vector<1x2x32xf32>
      %457 = vector.shape_cast %456 : vector<1x2x32xf32> to vector<2x32xf32>
      %458 = arith.addf %457, %442 : vector<2x32xf32>
      %459 = arith.negf %458 : vector<2x32xf32>
      %460 = math.exp %459 : vector<2x32xf32>
      %cst_122 = arith.constant 1.000000e+00 : f32
      %461 = vector.broadcast %cst_122 : f32 to vector<2x32xf32>
      %462 = arith.addf %461, %460 : vector<2x32xf32>
      %463 = arith.divf %461, %462 : vector<2x32xf32>
      %464 = arith.index_cast %435 : i32 to index
      %c0_123 = arith.constant 0 : index
      %c0_124 = arith.constant 0 : index
      %465 = vector.load %arg3[%464, %c0_123, %c0_124] : memref<24x2x32xf32, #tpu.memory_space<vmem>>, vector<1x2x32xf32>
      %466 = vector.shape_cast %465 : vector<1x2x32xf32> to vector<2x32xf32>
      %467 = arith.mulf %454, %445 : vector<2x32xf32>
      %468 = arith.addf %466, %467 : vector<2x32xf32>
      %469 = math.tanh %468 : vector<2x32xf32>
      %cst_125 = arith.constant 1.000000e+00 : f32
      %470 = vector.broadcast %cst_125 : f32 to vector<2x32xf32>
      %471 = arith.subf %470, %463 : vector<2x32xf32>
      %472 = arith.mulf %471, %469 : vector<2x32xf32>
      %473 = arith.mulf %463, %423 : vector<2x32xf32>
      %474 = arith.addf %472, %473 : vector<2x32xf32>
      %475 = vector.broadcast %8 : vector<1x32xf32> to vector<2x32xf32>
      %476 = arith.mulf %474, %475 : vector<2x32xf32>
      %cst_126 = arith.constant dense<0.000000e+00> : vector<2xf32>
      %477 = vector.multi_reduction <add>, %476, %cst_126 [1] : vector<2x32xf32> to vector<2xf32>
      %478 = vector.broadcast %10 : f32 to vector<2xf32>
      %479 = arith.addf %477, %478 : vector<2xf32>
      %c6_i32_127 = arith.constant 6 : i32
      %480 = vector.broadcast %c6_i32_127 : i32 to vector<8x2xi32>
      %481 = arith.cmpi eq, %14, %480 : vector<8x2xi32>
      %482 = vector.shape_cast %479 : vector<2xf32> to vector<1x2xf32>
      %483 = vector.shape_cast %482 : vector<1x2xf32> to vector<1x2xf32>
      %484 = vector.broadcast %483 : vector<1x2xf32> to vector<8x2xf32>
      %485 = arith.select %481, %484, %434 : vector<8x2xi1>, vector<8x2xf32>
      %c7_i32 = arith.constant 7 : i32
      %486 = arith.addi %127, %c7_i32 : i32
      %487 = arith.truncf %474 : vector<2x32xf32> to vector<2x32xbf16>
      %cst_128 = arith.constant dense<0.000000e+00> : vector<2x32xf32>
      %488 = tpu.matmul %487, %1, %cst_128 {dimension_numbers = #tpu.dot_dimension_numbers<[1], [0], [0], [1], [0, 0, 1, 1], [], []>} : vector<2x32xbf16>, vector<32x32xbf16>, vector<2x32xf32> -> vector<2x32xf32>
      %489 = vector.broadcast %5 : vector<1x32xf32> to vector<2x32xf32>
      %490 = arith.addf %488, %489 : vector<2x32xf32>
      %cst_129 = arith.constant dense<0.000000e+00> : vector<2x32xf32>
      %491 = tpu.matmul %487, %2, %cst_129 {dimension_numbers = #tpu.dot_dimension_numbers<[1], [0], [0], [1], [0, 0, 1, 1], [], []>} : vector<2x32xbf16>, vector<32x32xbf16>, vector<2x32xf32> -> vector<2x32xf32>
      %492 = vector.broadcast %6 : vector<1x32xf32> to vector<2x32xf32>
      %493 = arith.addf %491, %492 : vector<2x32xf32>
      %cst_130 = arith.constant dense<0.000000e+00> : vector<2x32xf32>
      %494 = tpu.matmul %487, %3, %cst_130 {dimension_numbers = #tpu.dot_dimension_numbers<[1], [0], [0], [1], [0, 0, 1, 1], [], []>} : vector<2x32xbf16>, vector<32x32xbf16>, vector<2x32xf32> -> vector<2x32xf32>
      %495 = vector.broadcast %7 : vector<1x32xf32> to vector<2x32xf32>
      %496 = arith.addf %494, %495 : vector<2x32xf32>
      %497 = arith.index_cast %486 : i32 to index
      %c0_131 = arith.constant 0 : index
      %c0_132 = arith.constant 0 : index
      %498 = vector.load %arg1[%497, %c0_131, %c0_132] : memref<24x2x32xf32, #tpu.memory_space<vmem>>, vector<1x2x32xf32>
      %499 = vector.shape_cast %498 : vector<1x2x32xf32> to vector<2x32xf32>
      %500 = arith.addf %499, %490 : vector<2x32xf32>
      %501 = arith.negf %500 : vector<2x32xf32>
      %502 = math.exp %501 : vector<2x32xf32>
      %cst_133 = arith.constant 1.000000e+00 : f32
      %503 = vector.broadcast %cst_133 : f32 to vector<2x32xf32>
      %504 = arith.addf %503, %502 : vector<2x32xf32>
      %505 = arith.divf %503, %504 : vector<2x32xf32>
      %506 = arith.index_cast %486 : i32 to index
      %c0_134 = arith.constant 0 : index
      %c0_135 = arith.constant 0 : index
      %507 = vector.load %arg2[%506, %c0_134, %c0_135] : memref<24x2x32xf32, #tpu.memory_space<vmem>>, vector<1x2x32xf32>
      %508 = vector.shape_cast %507 : vector<1x2x32xf32> to vector<2x32xf32>
      %509 = arith.addf %508, %493 : vector<2x32xf32>
      %510 = arith.negf %509 : vector<2x32xf32>
      %511 = math.exp %510 : vector<2x32xf32>
      %cst_136 = arith.constant 1.000000e+00 : f32
      %512 = vector.broadcast %cst_136 : f32 to vector<2x32xf32>
      %513 = arith.addf %512, %511 : vector<2x32xf32>
      %514 = arith.divf %512, %513 : vector<2x32xf32>
      %515 = arith.index_cast %486 : i32 to index
      %c0_137 = arith.constant 0 : index
      %c0_138 = arith.constant 0 : index
      %516 = vector.load %arg3[%515, %c0_137, %c0_138] : memref<24x2x32xf32, #tpu.memory_space<vmem>>, vector<1x2x32xf32>
      %517 = vector.shape_cast %516 : vector<1x2x32xf32> to vector<2x32xf32>
      %518 = arith.mulf %505, %496 : vector<2x32xf32>
      %519 = arith.addf %517, %518 : vector<2x32xf32>
      %520 = math.tanh %519 : vector<2x32xf32>
      %cst_139 = arith.constant 1.000000e+00 : f32
      %521 = vector.broadcast %cst_139 : f32 to vector<2x32xf32>
      %522 = arith.subf %521, %514 : vector<2x32xf32>
      %523 = arith.mulf %522, %520 : vector<2x32xf32>
      %524 = arith.mulf %514, %474 : vector<2x32xf32>
      %525 = arith.addf %523, %524 : vector<2x32xf32>
      %526 = vector.broadcast %8 : vector<1x32xf32> to vector<2x32xf32>
      %527 = arith.mulf %525, %526 : vector<2x32xf32>
      %cst_140 = arith.constant dense<0.000000e+00> : vector<2xf32>
      %528 = vector.multi_reduction <add>, %527, %cst_140 [1] : vector<2x32xf32> to vector<2xf32>
      %529 = vector.broadcast %10 : f32 to vector<2xf32>
      %530 = arith.addf %528, %529 : vector<2xf32>
      %c7_i32_141 = arith.constant 7 : i32
      %531 = vector.broadcast %c7_i32_141 : i32 to vector<8x2xi32>
      %532 = arith.cmpi eq, %14, %531 : vector<8x2xi32>
      %533 = vector.shape_cast %530 : vector<2xf32> to vector<1x2xf32>
      %534 = vector.shape_cast %533 : vector<1x2xf32> to vector<1x2xf32>
      %535 = vector.broadcast %534 : vector<1x2xf32> to vector<8x2xf32>
      %536 = arith.select %532, %535, %485 : vector<8x2xi1>, vector<8x2xf32>
      %c16_i32_142 = arith.constant 16 : i32
      %537 = arith.addi %c16_i32_142, %127 : i32
      %538 = tpu.assume_multiple %537, 8 : i32
      %539 = arith.index_cast %538 : i32 to index
      %c0_143 = arith.constant 0 : index
      %540 = vector.load %arg10[%539, %c0_143] : memref<56x2xf32, #tpu.memory_space<vmem>>, vector<8x2xf32>
      tpu.vector_store %arg10[%539, %c0_143], %536 {strides = array<i32>} : memref<56x2xf32, #tpu.memory_space<vmem>>, vector<8x2xf32>,
      scf.yield %525 : vector<2x32xf32>
    }
    %c3_i32_10 = arith.constant 3 : i32
    %c0_11 = arith.constant 0 : index
    %c0_12 = arith.constant 0 : index
    %17 = vector.load %arg10[%c0_11, %c0_12] : memref<56x2xf32, #tpu.memory_space<vmem>>, vector<56x2xf32>
    %c0_13 = arith.constant 0 : index
    %c0_14 = arith.constant 0 : index
    %18 = vector.load %arg8[%c0_13, %c0_14] : memref<2x1xi32, #tpu.memory_space<vmem>>, vector<2x1xi32>
    %19 = vector.shape_cast %18 : vector<2x1xi32> to vector<2xi32>
    %c24_i32 = arith.constant 24 : i32
    %20 = vector.broadcast %c24_i32 : i32 to vector<2xi32>
    %21 = arith.minsi %19, %20 : vector<2xi32>
    %22 = tpu.iota {dimensions = array<i32: 0>} : vector<56x2xi32>
    %c16_i32 = arith.constant 16 : i32
    %23 = vector.broadcast %c16_i32 : i32 to vector<56x2xi32>
    %24 = arith.cmpi sge, %22, %23 : vector<56x2xi32>
    %25 = vector.shape_cast %21 : vector<2xi32> to vector<1x2xi32>
    %c16_i32_15 = arith.constant 16 : i32
    %26 = vector.broadcast %c16_i32_15 : i32 to vector<1x2xi32>
    %27 = arith.addi %26, %25 : vector<1x2xi32>
    %28 = vector.broadcast %27 : vector<1x2xi32> to vector<56x2xi32>
    %29 = arith.cmpi slt, %22, %28 : vector<56x2xi32>
    %30 = arith.andi %24, %29 : vector<56x2xi1>
    %cst_16 = arith.constant 0.000000e+00 : f32
    %31 = vector.broadcast %cst_16 : f32 to vector<56x2xf32>
    %32 = arith.subf %31, %17 : vector<56x2xf32>
    %33 = math.exp %32 : vector<56x2xf32>
    %cst_17 = arith.constant 0.000000e+00 : f32
    %34 = vector.broadcast %cst_17 : f32 to vector<56x2xf32>
    %35 = arith.select %30, %33, %34 : vector<56x2xi1>, vector<56x2xf32>
    %cst_18 = arith.constant 0.000000e+00 : f32
    %36 = vector.broadcast %cst_18 : f32 to vector<56x2xf32>
    %37 = arith.select %30, %17, %36 : vector<56x2xi1>, vector<56x2xf32>
    %38 = arith.mulf %37, %35 : vector<56x2xf32>
    %39 = vector.extract_strided_slice %17 {offsets = [16, 0], sizes = [24, 2], strides = [1, 1]} : vector<56x2xf32> to vector<24x2xf32>
    %40 = vector.extract_strided_slice %38 {offsets = [16, 0], sizes = [24, 2], strides = [1, 1]} : vector<56x2xf32> to vector<24x2xf32>
    %41 = vector.extract_strided_slice %35 {offsets = [16, 0], sizes = [24, 2], strides = [1, 1]} : vector<56x2xf32> to vector<24x2xf32>
    %42 = vector.extract_strided_slice %17 {offsets = [15, 0], sizes = [24, 2], strides = [1, 1]} : vector<56x2xf32> to vector<24x2xf32>
    %43 = arith.minimumf %39, %42 : vector<24x2xf32>
    %44 = vector.extract_strided_slice %38 {offsets = [17, 0], sizes = [24, 2], strides = [1, 1]} : vector<56x2xf32> to vector<24x2xf32>
    %45 = arith.addf %40, %44 : vector<24x2xf32>
    %46 = vector.extract_strided_slice %35 {offsets = [17, 0], sizes = [24, 2], strides = [1, 1]} : vector<56x2xf32> to vector<24x2xf32>
    %47 = arith.addf %41, %46 : vector<24x2xf32>
    %48 = vector.extract_strided_slice %17 {offsets = [14, 0], sizes = [24, 2], strides = [1, 1]} : vector<56x2xf32> to vector<24x2xf32>
    %49 = arith.minimumf %43, %48 : vector<24x2xf32>
    %50 = vector.extract_strided_slice %38 {offsets = [18, 0], sizes = [24, 2], strides = [1, 1]} : vector<56x2xf32> to vector<24x2xf32>
    %51 = arith.addf %45, %50 : vector<24x2xf32>
    %52 = vector.extract_strided_slice %35 {offsets = [18, 0], sizes = [24, 2], strides = [1, 1]} : vector<56x2xf32> to vector<24x2xf32>
    %53 = arith.addf %47, %52 : vector<24x2xf32>
    %54 = vector.extract_strided_slice %17 {offsets = [13, 0], sizes = [24, 2], strides = [1, 1]} : vector<56x2xf32> to vector<24x2xf32>
    %55 = arith.minimumf %49, %54 : vector<24x2xf32>
    %56 = vector.extract_strided_slice %38 {offsets = [19, 0], sizes = [24, 2], strides = [1, 1]} : vector<56x2xf32> to vector<24x2xf32>
    %57 = arith.addf %51, %56 : vector<24x2xf32>
    %58 = vector.extract_strided_slice %35 {offsets = [19, 0], sizes = [24, 2], strides = [1, 1]} : vector<56x2xf32> to vector<24x2xf32>
    %59 = arith.addf %53, %58 : vector<24x2xf32>
    %60 = vector.extract_strided_slice %17 {offsets = [12, 0], sizes = [24, 2], strides = [1, 1]} : vector<56x2xf32> to vector<24x2xf32>
    %61 = arith.minimumf %55, %60 : vector<24x2xf32>
    %62 = vector.extract_strided_slice %38 {offsets = [20, 0], sizes = [24, 2], strides = [1, 1]} : vector<56x2xf32> to vector<24x2xf32>
    %63 = arith.addf %57, %62 : vector<24x2xf32>
    %64 = vector.extract_strided_slice %35 {offsets = [20, 0], sizes = [24, 2], strides = [1, 1]} : vector<56x2xf32> to vector<24x2xf32>
    %65 = arith.addf %59, %64 : vector<24x2xf32>
    %66 = vector.extract_strided_slice %17 {offsets = [11, 0], sizes = [24, 2], strides = [1, 1]} : vector<56x2xf32> to vector<24x2xf32>
    %67 = arith.minimumf %61, %66 : vector<24x2xf32>
    %68 = vector.extract_strided_slice %38 {offsets = [21, 0], sizes = [24, 2], strides = [1, 1]} : vector<56x2xf32> to vector<24x2xf32>
    %69 = arith.addf %63, %68 : vector<24x2xf32>
    %70 = vector.extract_strided_slice %35 {offsets = [21, 0], sizes = [24, 2], strides = [1, 1]} : vector<56x2xf32> to vector<24x2xf32>
    %71 = arith.addf %65, %70 : vector<24x2xf32>
    %72 = vector.extract_strided_slice %17 {offsets = [10, 0], sizes = [24, 2], strides = [1, 1]} : vector<56x2xf32> to vector<24x2xf32>
    %73 = arith.minimumf %67, %72 : vector<24x2xf32>
    %74 = vector.extract_strided_slice %38 {offsets = [22, 0], sizes = [24, 2], strides = [1, 1]} : vector<56x2xf32> to vector<24x2xf32>
    %75 = arith.addf %69, %74 : vector<24x2xf32>
    %76 = vector.extract_strided_slice %35 {offsets = [22, 0], sizes = [24, 2], strides = [1, 1]} : vector<56x2xf32> to vector<24x2xf32>
    %77 = arith.addf %71, %76 : vector<24x2xf32>
    %78 = vector.extract_strided_slice %17 {offsets = [9, 0], sizes = [24, 2], strides = [1, 1]} : vector<56x2xf32> to vector<24x2xf32>
    %79 = arith.minimumf %73, %78 : vector<24x2xf32>
    %80 = vector.extract_strided_slice %38 {offsets = [23, 0], sizes = [24, 2], strides = [1, 1]} : vector<56x2xf32> to vector<24x2xf32>
    %81 = arith.addf %75, %80 : vector<24x2xf32>
    %82 = vector.extract_strided_slice %35 {offsets = [23, 0], sizes = [24, 2], strides = [1, 1]} : vector<56x2xf32> to vector<24x2xf32>
    %83 = arith.addf %77, %82 : vector<24x2xf32>
    %84 = vector.extract_strided_slice %17 {offsets = [8, 0], sizes = [24, 2], strides = [1, 1]} : vector<56x2xf32> to vector<24x2xf32>
    %85 = arith.minimumf %79, %84 : vector<24x2xf32>
    %86 = vector.extract_strided_slice %38 {offsets = [24, 0], sizes = [24, 2], strides = [1, 1]} : vector<56x2xf32> to vector<24x2xf32>
    %87 = arith.addf %81, %86 : vector<24x2xf32>
    %88 = vector.extract_strided_slice %35 {offsets = [24, 0], sizes = [24, 2], strides = [1, 1]} : vector<56x2xf32> to vector<24x2xf32>
    %89 = arith.addf %83, %88 : vector<24x2xf32>
    %90 = vector.extract_strided_slice %17 {offsets = [7, 0], sizes = [24, 2], strides = [1, 1]} : vector<56x2xf32> to vector<24x2xf32>
    %91 = arith.minimumf %85, %90 : vector<24x2xf32>
    %92 = vector.extract_strided_slice %38 {offsets = [25, 0], sizes = [24, 2], strides = [1, 1]} : vector<56x2xf32> to vector<24x2xf32>
    %93 = arith.addf %87, %92 : vector<24x2xf32>
    %94 = vector.extract_strided_slice %35 {offsets = [25, 0], sizes = [24, 2], strides = [1, 1]} : vector<56x2xf32> to vector<24x2xf32>
    %95 = arith.addf %89, %94 : vector<24x2xf32>
    %96 = vector.extract_strided_slice %17 {offsets = [6, 0], sizes = [24, 2], strides = [1, 1]} : vector<56x2xf32> to vector<24x2xf32>
    %97 = arith.minimumf %91, %96 : vector<24x2xf32>
    %98 = vector.extract_strided_slice %38 {offsets = [26, 0], sizes = [24, 2], strides = [1, 1]} : vector<56x2xf32> to vector<24x2xf32>
    %99 = arith.addf %93, %98 : vector<24x2xf32>
    %100 = vector.extract_strided_slice %35 {offsets = [26, 0], sizes = [24, 2], strides = [1, 1]} : vector<56x2xf32> to vector<24x2xf32>
    %101 = arith.addf %95, %100 : vector<24x2xf32>
    %102 = vector.extract_strided_slice %17 {offsets = [5, 0], sizes = [24, 2], strides = [1, 1]} : vector<56x2xf32> to vector<24x2xf32>
    %103 = arith.minimumf %97, %102 : vector<24x2xf32>
    %104 = vector.extract_strided_slice %38 {offsets = [27, 0], sizes = [24, 2], strides = [1, 1]} : vector<56x2xf32> to vector<24x2xf32>
    %105 = arith.addf %99, %104 : vector<24x2xf32>
    %106 = vector.extract_strided_slice %35 {offsets = [27, 0], sizes = [24, 2], strides = [1, 1]} : vector<56x2xf32> to vector<24x2xf32>
    %107 = arith.addf %101, %106 : vector<24x2xf32>
    %108 = arith.divf %105, %107 : vector<24x2xf32>
    %cst_19 = arith.constant 5.000000e-01 : f32
    %109 = vector.broadcast %cst_19 : f32 to vector<24x2xf32>
    %110 = arith.mulf %109, %108 : vector<24x2xf32>
    %cst_20 = arith.constant 5.000000e-01 : f32
    %111 = vector.broadcast %cst_20 : f32 to vector<24x2xf32>
    %112 = arith.mulf %111, %103 : vector<24x2xf32>
    %113 = arith.addf %110, %112 : vector<24x2xf32>
    %114 = tpu.iota {dimensions = array<i32: 0>} : vector<24x2xi32>
    %115 = vector.shape_cast %21 : vector<2xi32> to vector<1x2xi32>
    %116 = vector.broadcast %115 : vector<1x2xi32> to vector<24x2xi32>
    %117 = arith.cmpi slt, %114, %116 : vector<24x2xi32>
    %c1_i32_21 = arith.constant 1 : i32
    %118 = vector.broadcast %c1_i32_21 : i32 to vector<2xi32>
    %119 = arith.maxsi %21, %118 : vector<2xi32>
    %120 = arith.sitofp %119 : vector<2xi32> to vector<2xf32>
    %cst_22 = arith.constant 0.000000e+00 : f32
    %121 = vector.broadcast %cst_22 : f32 to vector<24x2xf32>
    %122 = arith.select %117, %113, %121 : vector<24x2xi1>, vector<24x2xf32>
    %cst_23 = arith.constant dense<0.000000e+00> : vector<2xf32>
    %123 = vector.multi_reduction <add>, %122, %cst_23 [0] : vector<24x2xf32> to vector<2xf32>
    %124 = arith.divf %123, %120 : vector<2xf32>
    %125 = vector.shape_cast %124 : vector<2xf32> to vector<2x1xf32>
    %c0_24 = arith.constant 0 : index
    %c0_25 = arith.constant 0 : index
    %126 = vector.load %arg9[%c0_24, %c0_25] : memref<2x1xf32, #tpu.memory_space<vmem>>, vector<2x1xf32>
    tpu.vector_store %arg9[%c0_24, %c0_25], %125 {strides = array<i32>} : memref<2x1xf32, #tpu.memory_space<vmem>>, vector<2x1xf32>,
    return
  }
  func.func @transform_0(%arg0: i32) -> (i32, i32, i32) {
    %c0_i32 = arith.constant 0 : i32
    %c0_i32_0 = arith.constant 0 : i32
    %c0_i32_1 = arith.constant 0 : i32
    return %c0_i32, %arg0, %c0_i32_0 : i32, i32, i32
  }
  func.func @transform_1(%arg0: i32) -> (i32, i32, i32) {
    %c0_i32 = arith.constant 0 : i32
    %c0_i32_0 = arith.constant 0 : i32
    %c0_i32_1 = arith.constant 0 : i32
    return %c0_i32, %arg0, %c0_i32_0 : i32, i32, i32
  }
  func.func @transform_2(%arg0: i32) -> (i32, i32, i32) {
    %c0_i32 = arith.constant 0 : i32
    %c0_i32_0 = arith.constant 0 : i32
    %c0_i32_1 = arith.constant 0 : i32
    return %c0_i32, %arg0, %c0_i32_0 : i32, i32, i32
  }
  func.func @transform_3(%arg0: i32) -> (i32, i32) {
    %c0_i32 = arith.constant 0 : i32
    %c0_i32_0 = arith.constant 0 : i32
    %c0_i32_1 = arith.constant 0 : i32
    return %c0_i32, %c0_i32_0 : i32, i32
  }
  func.func @transform_4(%arg0: i32) -> (i32, i32) {
    %c0_i32 = arith.constant 0 : i32
    %c0_i32_0 = arith.constant 0 : i32
    %c0_i32_1 = arith.constant 0 : i32
    return %c0_i32, %c0_i32_0 : i32, i32
  }
  func.func @transform_5(%arg0: i32) -> (i32, i32) {
    %c0_i32 = arith.constant 0 : i32
    %c0_i32_0 = arith.constant 0 : i32
    %c0_i32_1 = arith.constant 0 : i32
    return %c0_i32, %c0_i32_0 : i32, i32
  }
  func.func @transform_6(%arg0: i32) -> (i32, i32) {
    %c0_i32 = arith.constant 0 : i32
    %c0_i32_0 = arith.constant 0 : i32
    %c0_i32_1 = arith.constant 0 : i32
    return %c0_i32, %c0_i32_0 : i32, i32
  }
  func.func @transform_7(%arg0: i32) -> (i32, i32) {
    %c0_i32 = arith.constant 0 : i32
    %c0_i32_0 = arith.constant 0 : i32
    return %arg0, %c0_i32 : i32, i32
  }
  func.func @transform_8(%arg0: i32) -> (i32, i32) {
    %c0_i32 = arith.constant 0 : i32
    %c0_i32_0 = arith.constant 0 : i32
    return %arg0, %c0_i32 : i32, i32
  }
}

</mosaic_0001>

<bundles_post_ra>
// kernel: i3d_resnet_vqa_forward.2
= control target key start
LH: loop header
LB: loop body
LE: loop exit
PB: predicated region body
PF: predicated region fallthrough
CT: control target
= control target key end

     0   :  { %v189_v0 = vmov 0.0   ;;  %vm190_vm0 = vmmov 0   ;;  %vm63_vm1 = vcmask 523264   ;;  %s265_s1 = inlined_call_operand.vmem [shape: bf16[64,128], index: 1, kind: input, shape index: {}]   ;;  %s266_s0 = inlined_call_operand.vmem [shape: f32[48,64], index: 0, kind: input, shape index: {}]   ;;  %s267_s2 = inlined_call_operand.vmem [shape: f32[1,128], index: 2, kind: input, shape index: {}]   ;;  %s268_s3 = inlined_call_operand.vmem [shape: f32[48,128], index: 3, kind: output, shape index: {}]  }
   0x1   :  { %175 = vmatprep.subr.bf16.mxu1 %v189_v0  ;;  %v185_v1 = vld [vmem:[%s265_s1] sm:$0xff]   ;;  %155 = vmatprep.subr.bf16.mxu0 %v189_v0  ;;  %v186_v2 = vld [vmem:[%s265_s1 + $0x8] sm:$0xff]   ;;  %v187_v3 = vld [vmem:[%s265_s1 + $0x10] sm:$0xff]  }
   0x2   :  { %167 = vmatprep.mubr.msk.bf16.mxu1 %vm190_vm0, %v189_v0  ;;  %163 = vmatprep.mubr.msk.bf16.mxu0 %vm190_vm0, %v189_v0  ;;  %v188_v4 = vld [vmem:[%s265_s1 + $0x18] sm:$0xff]   ;;  %v17_v5 = vld [vmem:[%s266_s0 + $0x10] sm:$0xff]  ;;  %v15_v7 = vld [vmem:[%s266_s0] sm:$0xff] }
   0x3   :  { %179 = vmatpush3.bf16.msra.mxu1 %v185_v1  ;;  %156 = vmatpush3.bf16.msra.mxu0 %v185_v1  ;;  %v18_v6 = vld [vmem:[%s266_s0 + $0x18] sm:$0xff]  ;;  %v16_v8 = vld [vmem:[%s266_s0 + $0x8] sm:$0xff]  ;;  %v19_v11 = vld [vmem:[%s266_s0 + $0x20] sm:$0xff] }
   0x4   :  { %176 = vmatprep.subr.bf16.mxu1 %v189_v0  ;;  %157 = vmatprep.subr.bf16.mxu0 %v189_v0  ;;  %v22_v9 = vpack.c.bf16 %v18_v6, %v17_v5  ;;  %v21_v10 = vpack.c.bf16 %v16_v8, %v15_v7  ;;  %v20_v12 = vld [vmem:[%s266_s0 + $0x28] sm:$0xff]  ;;  %v140_v14 = vld [vmem:[%s267_s2] ss:$0 sm:$0xff] }
   0x5   :  { %v23_v13 = vpack.c.bf16 %v20_v12, %v19_v11 }
   0x7   :  { %180 = vmatpush3.bf16.msra.mxu1 %v186_v2  ;;  %158 = vmatpush3.bf16.msra.mxu0 %v186_v2 }
   0x8   :  { %177 = vmatprep.subr.bf16.mxu1 %v189_v0  ;;  %159 = vmatprep.subr.bf16.mxu0 %v189_v0 }
   0xb   :  { %181 = vmatpush3.bf16.msra.mxu1 %v187_v3  ;;  %160 = vmatpush3.bf16.msra.mxu0 %v187_v3 }
   0xc   :  { %178 = vmatprep.subr.bf16.mxu1 %v189_v0  ;;  %161 = vmatprep.subr.bf16.mxu0 %v189_v0 }
   0xf   :  { %182 = vmatpush3.bf16.msra.mxu1 %v188_v4  ;;  %162 = vmatpush3.bf16.msra.mxu0 %v188_v4 }
  0x12   :  { %168 = vmatmul.mubr.msk.bf16.vlgmr.msra.gmra.mrb[0].mxu1 %vm63_vm1, %v22_v9  ;;  %164 = vmatmul.mubr.msk.bf16.vlgmr.msra.gmra.mrb[0].mxu0 %vm63_vm1, %v21_v10 }
  0x13   :  { %171 = vmatprep.mubr.msk.bf16.mxu1 %vm190_vm0, %v189_v0 }
  0x1a   :  { %172 = vmatmul.mubr.msk.bf16.gmra.mrb[4].mxu1 %vm63_vm1, %v23_v13 }
  0xe5   :  { %v115_v15 = vpop.f32.mrb[0].mxu1  ;;  %v107_v16 = vpop.f32.mrb[0].mxu0 }
  0xe6   :  { %v116_v17 = vadd.f32 %v140_v14, %v115_v15  ;;  %v169_v18 = vpop.f32.mrb[1].mxu1  ;;  %v108_v19 = vadd.f32 %v140_v14, %v107_v16  ;;  %v165_v20 = vpop.f32.mrb[1].mxu0 }
  0xe7   :  { %v118_v21 = vpop.f32.mrb[2].mxu1  ;;  %v110_v22 = vpop.f32.mrb[2].mxu0 }
  0xe8   :  { %132 = vst [vmem:[%s268_s3 + $0x10] sm:$0xff] %v116_v17  ;;  %v119_v23 = vadd.f32 %v140_v14, %v118_v21  ;;  %v170_v24 = vpop.f32.mrb[3].mxu1  ;;  %130 = vst [vmem:[%s268_s3] sm:$0xff] %v108_v19  ;;  %v111_v25 = vadd.f32 %v140_v14, %v110_v22  ;;  %v166_v26 = vpop.f32.mrb[3].mxu0 }
  0xea   :  { %133 = vst [vmem:[%s268_s3 + $0x18] sm:$0xff] %v119_v23  ;;  %131 = vst [vmem:[%s268_s3 + $0x8] sm:$0xff] %v111_v25 }
  0xed   :  { %v123_v27 = vpop.f32.mrb[4].mxu1 }
  0xee   :  { %v124_v28 = vadd.f32 %v140_v14, %v123_v27  ;;  %v173_v29 = vpop.f32.mrb[5].mxu1 }
  0xef   :  { %v126_v30 = vpop.f32.mrb[6].mxu1 }
  0xf0   :  { %134 = vst [vmem:[%s268_s3 + $0x20] sm:$0xff] %v124_v28  ;;  %v127_v31 = vadd.f32 %v140_v14, %v126_v30  ;;  %v174_v32 = vpop.f32.mrb[7].mxu1 }
  0xf2   :  { %135 = vst [vmem:[%s268_s3 + $0x28] sm:$0xff] %v127_v31 }

// kernel: i3d_resnet_vqa_forward.3
= control target key start
LH: loop header
LB: loop body
LE: loop exit
PB: predicated region body
PF: predicated region fallthrough
CT: control target
= control target key end

     0   :  { %vm40_vm0 = vcmask 15360   ;;  %v48_v0 = vlaneseq  ;;  %v2640_v5 = vmov inf   ;;  %v2736_v11 = vmov 0.0   ;;  %s3440_s0 = inlined_call_operand.vmem [shape: f32[24,2,32], index: 0, kind: input, shape index: {}]   ;;  %s3441_s1 = inlined_call_operand.vmem [shape: f32[24,2,32], index: 1, kind: input, shape index: {}]   ;;  %s3442_s2 = inlined_call_operand.vmem [shape: f32[24,2,32], index: 2, kind: input, shape index: {}]   ;;  %s3443_s3 = inlined_call_operand.vmem [shape: bf16[32,96], index: 3, kind: input, shape index: {}]   ;;  %s3444_s4 = inlined_call_operand.vmem [shape: f32[1,96], index: 4, kind: input, shape index: {}]   ;;  %s3445_s5 = inlined_call_operand.vmem [shape: f32[1,32], index: 5, kind: input, shape index: {}]   ;;  %s3446_s6 = inlined_call_operand.<no memory space> [shape: f32[1,1], index: 6, kind: input, shape index: {}]   ;;  %s3447_s7 = inlined_call_operand.vmem [shape: s32[2,1], index: 7, kind: input, shape index: {}]   ;;  %s3448_s8 = inlined_call_operand.vmem [shape: f32[2,1], index: 8, kind: output, shape index: {}]  }
   0x1   :  { %v13_v1 = vstv %s3446_s6  ;;  %v2697_v2 = vld [vmem:[%s3443_s3] sm:$0xf]  ;;  %v2702_v3 = vld [vmem:[%s3443_s3 + $0x4] sm:$0xf]  ;;  %v2707_v4 = vld [vmem:[%s3443_s3 + $0x8] sm:$0xf] }
   0x2   :  { %41 = vst.msk [vmem:[#allocation2] sm:$0xff] %vm40_vm0, %v2640_v5  ;;  %42 = vst.msk [vmem:[#allocation2 + $0x8] sm:$0xff] %vm40_vm0, %v2640_v5  ;;  %v2719_v6 = vld [vmem:[%s3443_s3 + $0xc] sm:$0xf]  ;;  %v2724_v7 = vld [vmem:[%s3444_s4] ss:$0 sm:$0xff] }
   0x3   :  { %43 = vst.msk [vmem:[#allocation2 + $0x10] sm:$0xff] %vm40_vm0, %v2640_v5  ;;  %44 = vst.msk [vmem:[#allocation2 + $0x18] sm:$0xff] %vm40_vm0, %v2640_v5  ;;  %v2729_v8 = vld [vmem:[%s3445_s5] ss:$0 sm:$0xff]  ;;  %v2732_v9 = vshrl.u32 %v48_v0, 7  ;;  %s2738_s3 = smov 0  }
   0x4   :  { %45 = vst.msk [vmem:[#allocation2 + $0x20] sm:$0xff] %vm40_vm0, %v2640_v5  ;;  %46 = vst.msk [vmem:[#allocation2 + $0x28] sm:$0xff] %vm40_vm0, %v2640_v5 }
   0x5   :  { %47 = vst.msk [vmem:[#allocation2 + $0x30] sm:$0xff] %vm40_vm0, %v2640_v5  ;;  %14 = vst [vmem:[#allocation3] sm:$0x1] %v13_v1 }
   0x6   :  { %3465 = vst [vmem:[#allocation4_spill] sm:$0xff] %v2732_v9 }
   0xc   :  { %v38_v10 = vld [vmem:[#allocation3] sm:$0x1] }
   0xd   :  { %2500 = vpush %v38_v10 }
  0x3e   :  { %s2734_s18 = spop %2500 }
  0x3f LB: > { %v2748_v12 = vcombine.low %v2697_v2, %v2702_v3  ;;  %v2641_v13 = vmov 0.0   ;;  %vm2642_vm1 = vmmov 0   ;;  %s2643_s4 = smov 64   ;;  %s2644_s5 = smov 96   ;;  %v2757_v14 = vcombine.low %v2707_v4, %v2719_v6  ;;  %s2638_s3 = sphi %s2738_s3, %s55_s3   ;;  %v2634_v11 = vphi %v2736_v11, %v1466_v11  }
  0x40   : > { %2308 = vmatprep.subr.bf16.mxu0 %v2641_v13  ;;  %2312 = vmatprep.mubr.msk.bf16.mxu0 %vm2642_vm1, %v2641_v13  ;;  %v58_v15 = vpack.c.bf16 %v2634_v11, %v2634_v11  ;;  %vm77_vm2 = vcmask 261120   ;;  %s2806_s19 = sshll.u32 %s2638_s3, 4  ;;  %vm254_vm3 = vcmask 254976   ;;  %vm260_vm4 = vcmp.eq.s32.totalorder %v2732_v9, 0  ;;  %s2212_s29 = sshll.u32 %s2638_s3, 3 }
  0x41   : > { %170 = vrot.lane.b32.xlu1 %v2748_v12, %s2643_s4  ;;  %121 = vrot.lane.b32.xlu0 %v2748_v12, %s2644_s5  ;;  %s2812_s22 = scalar_lea.vmem %s3440_s0, %s2806_s19  ;;  %s2820_s25 = scalar_lea.vmem %s3441_s1, %s2806_s19  ;;  %vm440_vm5 = vcmp.eq.s32.totalorder %v2732_v9, 1  ;;  %vm612_vm6 = vcmp.eq.s32.totalorder %v2732_v9, 2  ;;  %vm784_vm7 = vcmp.eq.s32.totalorder %v2732_v9, 3  ;;  %vm956_vm8 = vcmp.eq.s32.totalorder %v2732_v9, 4 }
  0x42   : > { %2309 = vmatpush3.bf16.msra.mxu0 %v2748_v12  ;;  %2316 = vmatprep.subr.bf16.mxu1 %v2641_v13  ;;  %v221_v25 = vld [vmem:[%s2812_s22] sm:$0x3]  ;;  %s2833_s28 = scalar_lea.vmem %s3442_s2, %s2806_s19  ;;  %v2119_v61 = vld [vmem:[%s2812_s22 + $0x2] sm:$0x3]  ;;  %vm1128_vm9 = vcmp.eq.s32.totalorder %v2732_v9, 5  ;;  %vm1300_vm10 = vcmp.eq.s32.totalorder %v2732_v9, 6 }
  0x43   : > { %2310 = vmatprep.subr.bf16.mxu0 %v2641_v13  ;;  %2320 = vmatprep.mubr.msk.bf16.mxu1 %vm2642_vm1, %v2641_v13  ;;  %v230_v34 = vld [vmem:[%s2820_s25] sm:$0x3]  ;;  %vm1472_vm11 = vcmp.eq.s32.totalorder %v2732_v9, 7  ;;  %s2093_s30 = scalar_lea.vmem [#allocation2], %s2212_s29  ;;  %s55_s3 = sadd.s32 1, %s2638_s3  }
  0x44   : > { %v239_v47 = vld [vmem:[%s2833_s28] sm:$0x3]  ;;  %p52_p0 = scmp.ge.s32.totalorder %s55_s3, 3  }
  0x45   : > { %172 = vrot.lane.b32.xlu1 %v2757_v14, %s2643_s4  ;;  %123 = vrot.lane.b32.xlu0 %v2757_v14, %s2644_s5  ;;  %vm1575_vm14 = vcmask (%p52_p0), 1040384   ;;  %vm1624_vm15 = vcmask (%p52_p0), 1041408  }
  0x46   : > { %2311 = vmatpush3.bf16.msra.mxu0 %v2757_v14 }
  0x47   : > { %2324 = vmatprep.subr.bf16.mxu0 %v2641_v13 }
  0x49   : > { %2313 = vmatmul.mubr.msk.bf16.vlgmr.msra.gmra.mrb[0].mxu0 %vm77_vm2, %v58_v15  ;;  %127 = vrot.lane.b32.xlu0 %v2724_v7, %s2644_s5 }
  0x4a   : > { %2328 = vmatprep.mubr.msk.bf16.mxu0 %vm2642_vm1, %v2641_v13  ;;  %176 = vrot.lane.b32.xlu1 %v2724_v7, %s2643_s4 }
  0xb3   : > { %v2775_v16 = vpop.permute.xlu1 %170  ;;  %v2777_v17 = vpop.permute.xlu0 %121 }
  0xb4   : > { %2317 = vmatpush3.bf16.msra.mxu1 %v2777_v17  ;;  %2325 = vmatpush3.bf16.msra.mxu0 %v2775_v16 }
  0xb5   : > { %2318 = vmatprep.subr.bf16.mxu1 %v2641_v13  ;;  %2326 = vmatprep.subr.bf16.mxu0 %v2641_v13 }
  0xb7   : > { %v2783_v18 = vpop.permute.xlu1 %172  ;;  %v2785_v19 = vpop.permute.xlu0 %123 }
  0xb8   : > { %2319 = vmatpush3.bf16.msra.mxu1 %v2785_v19  ;;  %2327 = vmatpush3.bf16.msra.mxu0 %v2783_v18 }
  0xb9   : > { %2340 = vmatprep.subr.bf16.mxu0 %v2641_v13  ;;  %2332 = vmatprep.subr.bf16.mxu1 %v2641_v13 }
  0xbb   : > { %2321 = vmatmul.mubr.msk.bf16.vlgmr.msra.gmra.mrb[0].mxu1 %vm77_vm2, %v58_v15  ;;  %2329 = vmatmul.mubr.msk.bf16.vlgmr.msra.gmra.mrb[4].mxu0 %vm77_vm2, %v58_v15  ;;  %v2822_v30 = vpop.permute.xlu0 %127 }
  0xbc   : > { %2341 = vmatpush3.bf16.msra.mxu0 %v2777_v17  ;;  %2333 = vmatpush3.bf16.msra.mxu1 %v2748_v12  ;;  %v2824_v31 = vpop.permute.xlu1 %176 }
  0xbd   : > { %2342 = vmatprep.subr.bf16.mxu0 %v2641_v13  ;;  %2334 = vmatprep.subr.bf16.mxu1 %v2641_v13 }
  0xbe   : > { %2336 = vmatprep.mubr.msk.bf16.mxu1 %vm2642_vm1, %v2641_v13  ;;  %2344 = vmatprep.mubr.msk.bf16.mxu0 %vm2642_vm1, %v2641_v13 }
  0xc0   : > { %2343 = vmatpush3.bf16.msra.mxu0 %v2785_v19  ;;  %2335 = vmatpush3.bf16.msra.mxu1 %v2757_v14 }
  0xc1   : > { %2348 = vmatprep.subr.bf16.mxu1 %v2641_v13  ;;  %2356 = vmatprep.subr.bf16.mxu0 %v2641_v13 }
 0x11c   : > { %v115_v20 = vpop.f32.mrb[0].mxu0 }
 0x11d   : > { %v2314_v21 = vpop.f32.mrb[1].mxu0  ;;  %v116_v24 = vadd.f32 %v2724_v7, %v115_v20 }
 0x11e   : > { %v118_v22 = vpop.f32.mrb[2].mxu0  ;;  %v2123_v21 = vld [vmem:[%s2820_s25 + $0x2] sm:$0x3] }
 0x11f   : > { %v2315_v23 = vpop.f32.mrb[3].mxu0  ;;  %v222_v26 = vadd.f32 %v221_v25, %v116_v24 }
 0x121   : > { %v2111_v27 = vmul.f32 -1.442695, %v222_v26 }
 0x123   : > { %2524 = vpow2.f32 %v2111_v27 }
 0x12d   : > { %v2525_v28 = vpop.eup %2524 }
 0x12e   : > { %v226_v29 = vadd.f32 1.0, %v2525_v28 }
 0x130   : > { %2526 = vrcp.f32 %v226_v29 }
 0x13a   : > { %v2527_v32 = vpop.eup %2526 }
 0x18e   : > { %v164_v33 = vpop.f32.mrb[0].mxu1  ;;  %v213_v35 = vpop.f32.mrb[4].mxu0 }
 0x18f   : > { %v165_v36 = vadd.f32 %v164_v33, %v2822_v30  ;;  %v2322_v37 = vpop.f32.mrb[1].mxu1  ;;  %v2330_v38 = vpop.f32.mrb[5].mxu0  ;;  %v214_v39 = vadd.f32 %v213_v35, %v2824_v31 }
 0x190   : > { %v167_v40 = vpop.f32.mrb[2].mxu1  ;;  %v216_v41 = vpop.f32.mrb[6].mxu0 }
 0x191   : > { %v231_v42 = vadd.f32 %v230_v34, %v165_v36  ;;  %v2323_v43 = vpop.f32.mrb[3].mxu1  ;;  %v240_v44 = vmul.f32 %v2527_v32, %v214_v39  ;;  %v2331_v45 = vpop.f32.mrb[7].mxu0  ;;  %v2127_v39 = vld [vmem:[%s2833_s28 + $0x2] sm:$0x3] }
 0x193   : > { %v2112_v46 = vmul.f32 -1.442695, %v231_v42  ;;  %v241_v48 = vadd.f32 %v240_v44, %v239_v47 }
 0x195   : > { %2528 = vpow2.f32 %v2112_v46 }
 0x196   : > { %2530 = vtanh.f32 %v241_v48 }
 0x19f   : > { %v2529_v49 = vpop.eup %2528 }
 0x1a0   : > { %v235_v50 = vadd.f32 1.0, %v2529_v49  ;;  %v2531_v51 = vpop.eup %2530 }
 0x1a2   : > { %2532 = vrcp.f32 %v235_v50 }
 0x1ac   : > { %v2533_v52 = vpop.eup %2532 }
 0x1ad   : > { %v243_v53 = vsub.f32 1.0, %v2533_v52  ;;  %v245_v54 = vmul.f32 %v2634_v11, %v2533_v52  ;;  %v2133_v52 = vld [vmem:[%s2812_s22 + $0x4] sm:$0x3] }
 0x1af   : > { %v244_v55 = vmul.f32 %v2531_v51, %v243_v53 }
 0x1b1   : > { %v246_v56 = vadd.f32 %v245_v54, %v244_v55 }
 0x1b3   : > { %v283_v57 = vpack.c.bf16 %v246_v56, %v246_v56  ;;  %v253_v58 = vmul.f32 %v2729_v8, %v246_v56 }
 0x1b5   : > { %2337 = vmatmul.mubr.msk.bf16.vlgmr.msra.gmra.mrb[4].mxu1 %vm77_vm2, %v283_v57  ;;  %2345 = vmatmul.mubr.msk.bf16.vlgmr.msra.gmra.mrb[8].mxu0 %vm77_vm2, %v283_v57  ;;  %v255_v59 = vsel %vm254_vm3, %v253_v58, 0.0 }
 0x1b6   : > { %2349 = vmatpush3.bf16.msra.mxu1 %v2775_v16  ;;  %256 = vadd.xlane.f32.xlu0 %v255_v59 }
 0x1b7   : > { %2350 = vmatprep.subr.bf16.mxu1 %v2641_v13  ;;  %2352 = vmatprep.mubr.msk.bf16.mxu1 %vm2642_vm1, %v2641_v13 }
 0x1b8   : > { %2357 = vmatpush3.bf16.msra.mxu0 %v2748_v12  ;;  %2360 = vmatprep.mubr.msk.bf16.mxu0 %vm2642_vm1, %v2641_v13 }
 0x1b9   : > { %2358 = vmatprep.subr.bf16.mxu0 %v2641_v13 }
 0x1ba   : > { %2351 = vmatpush3.bf16.msra.mxu1 %v2783_v18 }
 0x1bb   : > { %2364 = vmatprep.subr.bf16.mxu1 %v2641_v13 }
 0x1bc   : > { %2359 = vmatpush3.bf16.msra.mxu0 %v2757_v14 }
 0x1bd   : > { %2353 = vmatmul.mubr.msk.bf16.vlgmr.msra.gmra.mrb[8].mxu1 %vm77_vm2, %v283_v57  ;;  %2372 = vmatprep.subr.bf16.mxu0 %v2641_v13 }
 0x1be   : > { %2365 = vmatpush3.bf16.msra.mxu1 %v2777_v17  ;;  %2368 = vmatprep.mubr.msk.bf16.mxu1 %vm2642_vm1, %v2641_v13 }
 0x1bf   : > { %2366 = vmatprep.subr.bf16.mxu1 %v2641_v13 }
 0x1c2   : > { %2367 = vmatpush3.bf16.msra.mxu1 %v2785_v19 }
 0x1c3   : > { %2380 = vmatprep.subr.bf16.mxu1 %v2641_v13 }
 0x288   : > { %v321_v60 = vpop.f32.mrb[4].mxu1  ;;  %v361_v62 = vpop.f32.mrb[8].mxu0 }
 0x289   : > { %v322_v63 = vadd.f32 %v2724_v7, %v321_v60  ;;  %v2338_v1 = vpop.f32.mrb[5].mxu1  ;;  %v2346_v5 = vpop.f32.mrb[9].mxu0  ;;  %v362_v10 = vadd.f32 %v361_v62, %v2822_v30 }
 0x28a   : > { %v324_v11 = vpop.f32.mrb[6].mxu1  ;;  %v364_v15 = vpop.f32.mrb[10].mxu0 }
 0x28b   : > { %v410_v20 = vadd.f32 %v2119_v61, %v322_v63  ;;  %v2339_v22 = vpop.f32.mrb[7].mxu1  ;;  %v2347_v23 = vpop.f32.mrb[11].mxu0  ;;  %v419_v25 = vadd.f32 %v2123_v21, %v362_v10  ;;  %v2137_v61 = vld [vmem:[%s2820_s25 + $0x4] sm:$0x3] }
 0x28d   : > { %v2120_v24 = vmul.f32 -1.442695, %v410_v20  ;;  %v2124_v28 = vmul.f32 -1.442695, %v419_v25 }
 0x28f   : > { %2534 = vpow2.f32 %v2120_v24 }
 0x290   : > { %v401_v26 = vpop.f32.mrb[8].mxu1  ;;  %2536 = vpow2.f32 %v2124_v28  ;;  %v2141_v28 = vld [vmem:[%s2833_s28 + $0x4] sm:$0x3] }
 0x291   : > { %v2354_v27 = vpop.f32.mrb[9].mxu1  ;;  %v402_v37 = vadd.f32 %v401_v26, %v2824_v31 }
 0x292   : > { %v404_v29 = vpop.f32.mrb[10].mxu1 }
 0x293   : > { %v2355_v32 = vpop.f32.mrb[11].mxu1 }
 0x299   : > { %v2535_v33 = vpop.eup %2534 }
 0x29a   : > { %v414_v34 = vadd.f32 1.0, %v2535_v33  ;;  %v2537_v35 = vpop.eup %2536 }
 0x29b   : > { %v423_v36 = vadd.f32 1.0, %v2537_v35 }
 0x29c   : > { %2538 = vrcp.f32 %v414_v34 }
 0x29d   : > { %2540 = vrcp.f32 %v423_v36 }
 0x2a6   : > { %v2539_v38 = vpop.eup %2538 }
 0x2a7   : > { %v428_v40 = vmul.f32 %v2539_v38, %v402_v37  ;;  %v2541_v42 = vpop.eup %2540 }
 0x2a8   : > { %v431_v43 = vsub.f32 1.0, %v2541_v42  ;;  %v433_v45 = vmul.f32 %v2541_v42, %v246_v56 }
 0x2a9   : > { %v429_v41 = vadd.f32 %v2127_v39, %v428_v40 }
 0x2ab   : > { %2542 = vtanh.f32 %v429_v41 }
 0x2b5   : > { %v2543_v44 = vpop.eup %2542 }
 0x2b6   : > { %v432_v46 = vmul.f32 %v2543_v44, %v431_v43  ;;  %v2147_v43 = vld [vmem:[%s2812_s22 + $0x6] sm:$0x3] }
 0x2b8   : > { %v434_v47 = vadd.f32 %v433_v45, %v432_v46 }
 0x2ba   : > { %v455_v48 = vpack.c.bf16 %v434_v47, %v434_v47  ;;  %v435_v49 = vmul.f32 %v2729_v8, %v434_v47 }
 0x2bc   : > { %2361 = vmatmul.mubr.msk.bf16.vlgmr.msra.gmra.mrb[12].mxu0 %vm77_vm2, %v455_v48  ;;  %2369 = vmatmul.mubr.msk.bf16.vlgmr.msra.gmra.mrb[12].mxu1 %vm77_vm2, %v455_v48  ;;  %v436_v50 = vsel %vm254_vm3, %v435_v49, 0.0 }
 0x2bd   : > { %2373 = vmatpush3.bf16.msra.mxu0 %v2775_v16  ;;  %437 = vadd.xlane.f32.xlu1 %v436_v50 }
 0x2be   : > { %2374 = vmatprep.subr.bf16.mxu0 %v2641_v13  ;;  %2376 = vmatprep.mubr.msk.bf16.mxu0 %vm2642_vm1, %v2641_v13 }
 0x2bf   : > { %2381 = vmatpush3.bf16.msra.mxu1 %v2748_v12  ;;  %2384 = vmatprep.mubr.msk.bf16.mxu1 %vm2642_vm1, %v2641_v13 }
 0x2c0   : > { %2382 = vmatprep.subr.bf16.mxu1 %v2641_v13 }
 0x2c1   : > { %2375 = vmatpush3.bf16.msra.mxu0 %v2783_v18 }
 0x2c2   : > { %2388 = vmatprep.subr.bf16.mxu0 %v2641_v13 }
 0x2c3   : > { %2383 = vmatpush3.bf16.msra.mxu1 %v2757_v14 }
 0x2c4   : > { %2377 = vmatmul.mubr.msk.bf16.vlgmr.msra.gmra.mrb[16].mxu0 %vm77_vm2, %v455_v48  ;;  %2396 = vmatprep.subr.bf16.mxu1 %v2641_v13 }
 0x2c5   : > { %2389 = vmatpush3.bf16.msra.mxu0 %v2777_v17  ;;  %2392 = vmatprep.mubr.msk.bf16.mxu0 %vm2642_vm1, %v2641_v13 }
 0x2c6   : > { %2390 = vmatprep.subr.bf16.mxu0 %v2641_v13 }
 0x2c9   : > { %2391 = vmatpush3.bf16.msra.mxu0 %v2785_v19 }
 0x2ca   : > { %2404 = vmatprep.subr.bf16.mxu0 %v2641_v13 }
 0x38f   : > { %v493_v51 = vpop.f32.mrb[12].mxu0  ;;  %v533_v53 = vpop.f32.mrb[12].mxu1 }
 0x390   : > { %v494_v54 = vadd.f32 %v2724_v7, %v493_v51  ;;  %v2362_v55 = vpop.f32.mrb[13].mxu0  ;;  %v2370_v56 = vpop.f32.mrb[13].mxu1  ;;  %v534_v57 = vadd.f32 %v533_v53, %v2822_v30 }
 0x391   : > { %v496_v58 = vpop.f32.mrb[14].mxu0  ;;  %v536_v59 = vpop.f32.mrb[14].mxu1 }
 0x392   : > { %v582_v60 = vadd.f32 %v2133_v52, %v494_v54  ;;  %v2363_v62 = vpop.f32.mrb[15].mxu0  ;;  %v2371_v63 = vpop.f32.mrb[15].mxu1  ;;  %v591_v5 = vadd.f32 %v2137_v61, %v534_v57  ;;  %v2151_v52 = vld [vmem:[%s2820_s25 + $0x6] sm:$0x3] }
 0x394   : > { %v2134_v1 = vmul.f32 -1.442695, %v582_v60  ;;  %v2138_v15 = vmul.f32 -1.442695, %v591_v5 }
 0x396   : > { %2544 = vpow2.f32 %v2134_v1 }
 0x397   : > { %v573_v10 = vpop.f32.mrb[16].mxu0  ;;  %2546 = vpow2.f32 %v2138_v15  ;;  %v2155_v15 = vld [vmem:[%s2833_s28 + $0x6] sm:$0x3] }
 0x398   : > { %v2378_v11 = vpop.f32.mrb[17].mxu0  ;;  %v574_v26 = vadd.f32 %v573_v10, %v2824_v31 }
 0x399   : > { %v576_v20 = vpop.f32.mrb[18].mxu0 }
 0x39a   : > { %v2379_v21 = vpop.f32.mrb[19].mxu0 }
 0x3a0   : > { %v2545_v22 = vpop.eup %2544 }
 0x3a1   : > { %v586_v23 = vadd.f32 1.0, %v2545_v22  ;;  %v2547_v24 = vpop.eup %2546 }
 0x3a2   : > { %v595_v25 = vadd.f32 1.0, %v2547_v24 }
 0x3a3   : > { %2548 = vrcp.f32 %v586_v23 }
 0x3a4   : > { %2550 = vrcp.f32 %v595_v25 }
 0x3ad   : > { %v2549_v27 = vpop.eup %2548 }
 0x3ae   : > { %v600_v29 = vmul.f32 %v2549_v27, %v574_v26  ;;  %v2551_v33 = vpop.eup %2550 }
 0x3af   : > { %v603_v34 = vsub.f32 1.0, %v2551_v33  ;;  %v605_v36 = vmul.f32 %v2551_v33, %v434_v47 }
 0x3b0   : > { %v601_v32 = vadd.f32 %v2141_v28, %v600_v29 }
 0x3b2   : > { %2552 = vtanh.f32 %v601_v32 }
 0x3bc   : > { %v2553_v35 = vpop.eup %2552 }
 0x3bd   : > { %v604_v37 = vmul.f32 %v2553_v35, %v603_v34  ;;  %v2161_v34 = vld [vmem:[%s2812_s22 + $0x8] sm:$0x3] }
 0x3bf   : > { %v606_v38 = vadd.f32 %v605_v36, %v604_v37 }
 0x3c1   : > { %v627_v39 = vpack.c.bf16 %v606_v38, %v606_v38  ;;  %v607_v40 = vmul.f32 %v2729_v8, %v606_v38 }
 0x3c3   : > { %2385 = vmatmul.mubr.msk.bf16.vlgmr.msra.gmra.mrb[16].mxu1 %vm77_vm2, %v627_v39  ;;  %2393 = vmatmul.mubr.msk.bf16.vlgmr.msra.gmra.mrb[20].mxu0 %vm77_vm2, %v627_v39  ;;  %v608_v41 = vsel %vm254_vm3, %v607_v40, 0.0 }
 0x3c4   : > { %2397 = vmatpush3.bf16.msra.mxu1 %v2775_v16  ;;  %609 = vadd.xlane.f32.xlu0 %v608_v41 }
 0x3c5   : > { %2398 = vmatprep.subr.bf16.mxu1 %v2641_v13  ;;  %2400 = vmatprep.mubr.msk.bf16.mxu1 %vm2642_vm1, %v2641_v13 }
 0x3c6   : > { %2405 = vmatpush3.bf16.msra.mxu0 %v2748_v12  ;;  %2408 = vmatprep.mubr.msk.bf16.mxu0 %vm2642_vm1, %v2641_v13 }
 0x3c7   : > { %2406 = vmatprep.subr.bf16.mxu0 %v2641_v13 }
 0x3c8   : > { %2399 = vmatpush3.bf16.msra.mxu1 %v2783_v18 }
 0x3c9   : > { %2412 = vmatprep.subr.bf16.mxu1 %v2641_v13 }
 0x3ca   : > { %2407 = vmatpush3.bf16.msra.mxu0 %v2757_v14 }
 0x3cb   : > { %2401 = vmatmul.mubr.msk.bf16.vlgmr.msra.gmra.mrb[20].mxu1 %vm77_vm2, %v627_v39  ;;  %2420 = vmatprep.subr.bf16.mxu0 %v2641_v13 }
 0x3cc   : > { %2413 = vmatpush3.bf16.msra.mxu1 %v2777_v17  ;;  %2416 = vmatprep.mubr.msk.bf16.mxu1 %vm2642_vm1, %v2641_v13 }
 0x3cd   : > { %2414 = vmatprep.subr.bf16.mxu1 %v2641_v13 }
 0x3d0   : > { %2415 = vmatpush3.bf16.msra.mxu1 %v2785_v19 }
 0x3d1   : > { %2428 = vmatprep.subr.bf16.mxu1 %v2641_v13 }
 0x496   : > { %v665_v42 = vpop.f32.mrb[16].mxu1  ;;  %v705_v44 = vpop.f32.mrb[20].mxu0 }
 0x497   : > { %v666_v45 = vadd.f32 %v2724_v7, %v665_v42  ;;  %v2386_v46 = vpop.f32.mrb[17].mxu1  ;;  %v2394_v47 = vpop.f32.mrb[21].mxu0  ;;  %v706_v48 = vadd.f32 %v705_v44, %v2822_v30 }
 0x498   : > { %v668_v49 = vpop.f32.mrb[18].mxu1  ;;  %v708_v50 = vpop.f32.mrb[22].mxu0 }
 0x499   : > { %v754_v51 = vadd.f32 %v2147_v43, %v666_v45  ;;  %v2387_v53 = vpop.f32.mrb[19].mxu1  ;;  %v2395_v54 = vpop.f32.mrb[23].mxu0  ;;  %v763_v56 = vadd.f32 %v2151_v52, %v706_v48  ;;  %v2165_v43 = vld [vmem:[%s2820_s25 + $0x8] sm:$0x3] }
 0x49b   : > { %v2148_v55 = vmul.f32 -1.442695, %v754_v51  ;;  %v2152_v59 = vmul.f32 -1.442695, %v763_v56 }
 0x49d   : > { %2554 = vpow2.f32 %v2148_v55 }
 0x49e   : > { %v745_v57 = vpop.f32.mrb[20].mxu1  ;;  %2556 = vpow2.f32 %v2152_v59  ;;  %v2169_v59 = vld [vmem:[%s2833_s28 + $0x8] sm:$0x3] }
 0x49f   : > { %v2402_v58 = vpop.f32.mrb[21].mxu1  ;;  %v746_v10 = vadd.f32 %v745_v57, %v2824_v31 }
 0x4a0   : > { %v748_v60 = vpop.f32.mrb[22].mxu1 }
 0x4a1   : > { %v2403_v61 = vpop.f32.mrb[23].mxu1 }
 0x4a7   : > { %v2555_v62 = vpop.eup %2554 }
 0x4a8   : > { %v758_v63 = vadd.f32 1.0, %v2555_v62  ;;  %v2557_v1 = vpop.eup %2556 }
 0x4a9   : > { %v767_v5 = vadd.f32 1.0, %v2557_v1 }
 0x4aa   : > { %2558 = vrcp.f32 %v758_v63 }
 0x4ab   : > { %2560 = vrcp.f32 %v767_v5 }
 0x4b4   : > { %v2559_v11 = vpop.eup %2558 }
 0x4b5   : > { %v772_v20 = vmul.f32 %v2559_v11, %v746_v10  ;;  %v2561_v22 = vpop.eup %2560 }
 0x4b6   : > { %v775_v23 = vsub.f32 1.0, %v2561_v22  ;;  %v777_v25 = vmul.f32 %v2561_v22, %v606_v38 }
 0x4b7   : > { %v773_v21 = vadd.f32 %v2155_v15, %v772_v20 }
 0x4b9   : > { %2562 = vtanh.f32 %v773_v21 }
 0x4c3   : > { %v2563_v24 = vpop.eup %2562 }
 0x4c4   : > { %v776_v26 = vmul.f32 %v2563_v24, %v775_v23  ;;  %v2175_v23 = vld [vmem:[%s2812_s22 + $0xa] sm:$0x3] }
 0x4c6   : > { %v778_v27 = vadd.f32 %v777_v25, %v776_v26 }
 0x4c8   : > { %v799_v28 = vpack.c.bf16 %v778_v27, %v778_v27  ;;  %v779_v29 = vmul.f32 %v2729_v8, %v778_v27 }
 0x4ca   : > { %2409 = vmatmul.mubr.msk.bf16.vlgmr.msra.gmra.mrb[24].mxu0 %vm77_vm2, %v799_v28  ;;  %2417 = vmatmul.mubr.msk.bf16.vlgmr.msra.gmra.mrb[24].mxu1 %vm77_vm2, %v799_v28  ;;  %v780_v32 = vsel %vm254_vm3, %v779_v29, 0.0 }
 0x4cb   : > { %2421 = vmatpush3.bf16.msra.mxu0 %v2775_v16  ;;  %781 = vadd.xlane.f32.xlu0 %v780_v32 }
 0x4cc   : > { %2422 = vmatprep.subr.bf16.mxu0 %v2641_v13  ;;  %2424 = vmatprep.mubr.msk.bf16.mxu0 %vm2642_vm1, %v2641_v13 }
 0x4cd   : > { %2429 = vmatpush3.bf16.msra.mxu1 %v2748_v12  ;;  %2432 = vmatprep.mubr.msk.bf16.mxu1 %vm2642_vm1, %v2641_v13 }
 0x4ce   : > { %2430 = vmatprep.subr.bf16.mxu1 %v2641_v13 }
 0x4cf   : > { %2423 = vmatpush3.bf16.msra.mxu0 %v2783_v18 }
 0x4d0   : > { %2436 = vmatprep.subr.bf16.mxu0 %v2641_v13 }
 0x4d1   : > { %2431 = vmatpush3.bf16.msra.mxu1 %v2757_v14 }
 0x4d2   : > { %2425 = vmatmul.mubr.msk.bf16.vlgmr.msra.gmra.mrb[28].mxu0 %vm77_vm2, %v799_v28  ;;  %2444 = vmatprep.subr.bf16.mxu1 %v2641_v13 }
 0x4d3   : > { %2437 = vmatpush3.bf16.msra.mxu0 %v2777_v17  ;;  %2440 = vmatprep.mubr.msk.bf16.mxu0 %vm2642_vm1, %v2641_v13 }
 0x4d4   : > { %2438 = vmatprep.subr.bf16.mxu0 %v2641_v13 }
 0x4d7   : > { %2439 = vmatpush3.bf16.msra.mxu0 %v2785_v19 }
 0x4d8   : > { %2452 = vmatprep.subr.bf16.mxu0 %v2641_v13 }
 0x59d   : > { %v837_v33 = vpop.f32.mrb[24].mxu0  ;;  %v877_v35 = vpop.f32.mrb[24].mxu1 }
 0x59e   : > { %v838_v36 = vadd.f32 %v2724_v7, %v837_v33  ;;  %v2410_v37 = vpop.f32.mrb[25].mxu0  ;;  %v2418_v38 = vpop.f32.mrb[25].mxu1  ;;  %v878_v39 = vadd.f32 %v877_v35, %v2822_v30 }
 0x59f   : > { %v840_v40 = vpop.f32.mrb[26].mxu0  ;;  %v880_v41 = vpop.f32.mrb[26].mxu1 }
 0x5a0   : > { %v926_v42 = vadd.f32 %v2161_v34, %v838_v36  ;;  %v2411_v44 = vpop.f32.mrb[27].mxu0  ;;  %v2419_v45 = vpop.f32.mrb[27].mxu1  ;;  %v935_v47 = vadd.f32 %v2165_v43, %v878_v39  ;;  %v2179_v34 = vld [vmem:[%s2820_s25 + $0xa] sm:$0x3] }
 0x5a2   : > { %v2162_v46 = vmul.f32 -1.442695, %v926_v42  ;;  %v2166_v50 = vmul.f32 -1.442695, %v935_v47 }
 0x5a4   : > { %2564 = vpow2.f32 %v2162_v46 }
 0x5a5   : > { %v917_v48 = vpop.f32.mrb[28].mxu0  ;;  %2566 = vpow2.f32 %v2166_v50  ;;  %v2183_v50 = vld [vmem:[%s2833_s28 + $0xa] sm:$0x3] }
 0x5a6   : > { %v2426_v49 = vpop.f32.mrb[29].mxu0  ;;  %v918_v57 = vadd.f32 %v917_v48, %v2824_v31 }
 0x5a7   : > { %v920_v51 = vpop.f32.mrb[30].mxu0 }
 0x5a8   : > { %v2427_v52 = vpop.f32.mrb[31].mxu0 }
 0x5ae   : > { %v2565_v53 = vpop.eup %2564 }
 0x5af   : > { %v930_v54 = vadd.f32 1.0, %v2565_v53  ;;  %v2567_v55 = vpop.eup %2566 }
 0x5b0   : > { %v939_v56 = vadd.f32 1.0, %v2567_v55 }
 0x5b1   : > { %2568 = vrcp.f32 %v930_v54 }
 0x5b2   : > { %2570 = vrcp.f32 %v939_v56 }
 0x5bb   : > { %v2569_v58 = vpop.eup %2568 }
 0x5bc   : > { %v944_v60 = vmul.f32 %v2569_v58, %v918_v57  ;;  %v2571_v62 = vpop.eup %2570 }
 0x5bd   : > { %v947_v63 = vsub.f32 1.0, %v2571_v62  ;;  %v949_v5 = vmul.f32 %v2571_v62, %v778_v27  ;;  %v2189_v62 = vld [vmem:[%s2812_s22 + $0xc] sm:$0x3] }
 0x5be   : > { %v945_v61 = vadd.f32 %v2169_v59, %v944_v60 }
 0x5c0   : > { %2572 = vtanh.f32 %v945_v61 }
 0x5ca   : > { %v2573_v1 = vpop.eup %2572 }
 0x5cb   : > { %v948_v10 = vmul.f32 %v2573_v1, %v947_v63 }
 0x5cd   : > { %v950_v11 = vadd.f32 %v949_v5, %v948_v10 }
 0x5cf   : > { %v971_v15 = vpack.c.bf16 %v950_v11, %v950_v11  ;;  %v951_v20 = vmul.f32 %v2729_v8, %v950_v11 }
 0x5d1   : > { %2433 = vmatmul.mubr.msk.bf16.vlgmr.msra.gmra.mrb[28].mxu1 %vm77_vm2, %v971_v15  ;;  %2441 = vmatmul.mubr.msk.bf16.vlgmr.msra.gmra.mrb[32].mxu0 %vm77_vm2, %v971_v15  ;;  %v952_v21 = vsel %vm254_vm3, %v951_v20, 0.0 }
 0x5d2   : > { %2445 = vmatpush3.bf16.msra.mxu1 %v2775_v16  ;;  %953 = vadd.xlane.f32.xlu1 %v952_v21 }
 0x5d3   : > { %2446 = vmatprep.subr.bf16.mxu1 %v2641_v13  ;;  %2448 = vmatprep.mubr.msk.bf16.mxu1 %vm2642_vm1, %v2641_v13 }
 0x5d4   : > { %2453 = vmatpush3.bf16.msra.mxu0 %v2748_v12  ;;  %2456 = vmatprep.mubr.msk.bf16.mxu0 %vm2642_vm1, %v2641_v13 }
 0x5d5   : > { %2454 = vmatprep.subr.bf16.mxu0 %v2641_v13 }
 0x5d6   : > { %2447 = vmatpush3.bf16.msra.mxu1 %v2783_v18 }
 0x5d7   : > { %2460 = vmatprep.subr.bf16.mxu1 %v2641_v13 }
 0x5d8   : > { %2455 = vmatpush3.bf16.msra.mxu0 %v2757_v14 }
 0x5d9   : > { %2449 = vmatmul.mubr.msk.bf16.vlgmr.msra.gmra.mrb[32].mxu1 %vm77_vm2, %v971_v15  ;;  %2468 = vmatprep.subr.bf16.mxu0 %v2641_v13 }
 0x5da   : > { %2461 = vmatpush3.bf16.msra.mxu1 %v2777_v17  ;;  %2464 = vmatprep.mubr.msk.bf16.mxu1 %vm2642_vm1, %v2641_v13 }
 0x5db   : > { %2462 = vmatprep.subr.bf16.mxu1 %v2641_v13 }
 0x5de   : > { %2463 = vmatpush3.bf16.msra.mxu1 %v2785_v19 }
 0x5df   : > { %2476 = vmatprep.subr.bf16.mxu1 %v2641_v13 }
 0x6a4   : > { %v1009_v22 = vpop.f32.mrb[28].mxu1  ;;  %v1049_v24 = vpop.f32.mrb[32].mxu0 }
 0x6a5   : > { %v1010_v25 = vadd.f32 %v2724_v7, %v1009_v22  ;;  %v2434_v26 = vpop.f32.mrb[29].mxu1  ;;  %v2442_v27 = vpop.f32.mrb[33].mxu0  ;;  %v1050_v28 = vadd.f32 %v1049_v24, %v2822_v30 }
 0x6a6   : > { %v1012_v29 = vpop.f32.mrb[30].mxu1  ;;  %v1052_v32 = vpop.f32.mrb[34].mxu0 }
 0x6a7   : > { %v1098_v33 = vadd.f32 %v2175_v23, %v1010_v25  ;;  %v2435_v35 = vpop.f32.mrb[31].mxu1  ;;  %v2443_v36 = vpop.f32.mrb[35].mxu0  ;;  %v1107_v38 = vadd.f32 %v2179_v34, %v1050_v28 }
 0x6a9   : > { %v2176_v37 = vmul.f32 -1.442695, %v1098_v33  ;;  %v2180_v41 = vmul.f32 -1.442695, %v1107_v38 }
 0x6ab   : > { %2574 = vpow2.f32 %v2176_v37  ;;  %v2197_v37 = vld [vmem:[%s2833_s28 + $0xc] sm:$0x3] }
 0x6ac   : > { %v1089_v39 = vpop.f32.mrb[32].mxu1  ;;  %2576 = vpow2.f32 %v2180_v41 }
 0x6ad   : > { %v2450_v40 = vpop.f32.mrb[33].mxu1  ;;  %v1090_v48 = vadd.f32 %v1089_v39, %v2824_v31 }
 0x6ae   : > { %v1092_v42 = vpop.f32.mrb[34].mxu1 }
 0x6af   : > { %v2451_v43 = vpop.f32.mrb[35].mxu1 }
 0x6b5   : > { %v2575_v44 = vpop.eup %2574 }
 0x6b6   : > { %v1102_v45 = vadd.f32 1.0, %v2575_v44  ;;  %v2577_v46 = vpop.eup %2576 }
 0x6b7   : > { %v1111_v47 = vadd.f32 1.0, %v2577_v46 }
 0x6b8   : > { %2578 = vrcp.f32 %v1102_v45 }
 0x6b9   : > { %2580 = vrcp.f32 %v1111_v47 }
 0x6c2   : > { %v2579_v49 = vpop.eup %2578 }
 0x6c3   : > { %v1116_v51 = vmul.f32 %v2579_v49, %v1090_v48  ;;  %v2581_v53 = vpop.eup %2580 }
 0x6c4   : > { %v1119_v54 = vsub.f32 1.0, %v2581_v53  ;;  %v1121_v56 = vmul.f32 %v2581_v53, %v950_v11 }
 0x6c5   : > { %v1117_v52 = vadd.f32 %v2183_v50, %v1116_v51  ;;  %v2203_v50 = vld [vmem:[%s2812_s22 + $0xe] sm:$0x3] }
 0x6c7   : > { %2582 = vtanh.f32 %v1117_v52 }
 0x6d1   : > { %v2583_v55 = vpop.eup %2582 }
 0x6d2   : > { %v1120_v57 = vmul.f32 %v2583_v55, %v1119_v54 }
 0x6d4   : > { %v1122_v58 = vadd.f32 %v1121_v56, %v1120_v57 }
 0x6d6   : > { %v1143_v59 = vpack.c.bf16 %v1122_v58, %v1122_v58  ;;  %v1123_v60 = vmul.f32 %v2729_v8, %v1122_v58 }
 0x6d8   : > { %2457 = vmatmul.mubr.msk.bf16.vlgmr.msra.gmra.mrb[36].mxu0 %vm77_vm2, %v1143_v59  ;;  %2465 = vmatmul.mubr.msk.bf16.vlgmr.msra.gmra.mrb[36].mxu1 %vm77_vm2, %v1143_v59  ;;  %v1124_v61 = vsel %vm254_vm3, %v1123_v60, 0.0 }
 0x6d9   : > { %2469 = vmatpush3.bf16.msra.mxu0 %v2775_v16  ;;  %1125 = vadd.xlane.f32.xlu0 %v1124_v61 }
 0x6da   : > { %2470 = vmatprep.subr.bf16.mxu0 %v2641_v13  ;;  %2472 = vmatprep.mubr.msk.bf16.mxu0 %vm2642_vm1, %v2641_v13 }
 0x6db   : > { %2477 = vmatpush3.bf16.msra.mxu1 %v2748_v12  ;;  %2480 = vmatprep.mubr.msk.bf16.mxu1 %vm2642_vm1, %v2641_v13 }
 0x6dc   : > { %2478 = vmatprep.subr.bf16.mxu1 %v2641_v13 }
 0x6dd   : > { %2471 = vmatpush3.bf16.msra.mxu0 %v2783_v18 }
 0x6de   : > { %2484 = vmatprep.subr.bf16.mxu0 %v2641_v13 }
 0x6df   : > { %2479 = vmatpush3.bf16.msra.mxu1 %v2757_v14 }
 0x6e0   : > { %2473 = vmatmul.mubr.msk.bf16.vlgmr.msra.gmra.mrb[40].mxu0 %vm77_vm2, %v1143_v59  ;;  %2492 = vmatprep.subr.bf16.mxu1 %v2641_v13 }
 0x6e1   : > { %2485 = vmatpush3.bf16.msra.mxu0 %v2777_v17  ;;  %2488 = vmatprep.mubr.msk.bf16.mxu0 %vm2642_vm1, %v2641_v13  ;;  %v2193_v17 = vld [vmem:[%s2820_s25 + $0xc] sm:$0x3] }
 0x6e2   : > { %2486 = vmatprep.subr.bf16.mxu0 %v2641_v13 }
 0x6e5   : > { %2487 = vmatpush3.bf16.msra.mxu0 %v2785_v19 }
 0x7ab   : > { %v1181_v12 = vpop.f32.mrb[36].mxu0  ;;  %v1221_v63 = vpop.f32.mrb[36].mxu1 }
 0x7ac   : > { %v1182_v1 = vadd.f32 %v2724_v7, %v1181_v12  ;;  %v2458_v14 = vpop.f32.mrb[37].mxu0  ;;  %v2466_v5 = vpop.f32.mrb[37].mxu1  ;;  %v1222_v10 = vadd.f32 %v1221_v63, %v2822_v30 }
 0x7ad   : > { %v1184_v11 = vpop.f32.mrb[38].mxu0  ;;  %v1224_v15 = vpop.f32.mrb[38].mxu1 }
 0x7ae   : > { %v1270_v20 = vadd.f32 %v2189_v62, %v1182_v1  ;;  %v2459_v21 = vpop.f32.mrb[39].mxu0  ;;  %v2467_v22 = vpop.f32.mrb[39].mxu1  ;;  %v1279_v24 = vadd.f32 %v2193_v17, %v1222_v10 }
 0x7b0   : > { %v2190_v23 = vmul.f32 -1.442695, %v1270_v20  ;;  %v2194_v26 = vmul.f32 -1.442695, %v1279_v24  ;;  %v2211_v20 = vld [vmem:[%s2833_s28 + $0xe] sm:$0x3] }
 0x7b2   : > { %2584 = vpow2.f32 %v2190_v23 }
 0x7b3   : > { %v1261_v19 = vpop.f32.mrb[40].mxu0  ;;  %2586 = vpow2.f32 %v2194_v26 }
 0x7b4   : > { %v2474_v25 = vpop.f32.mrb[41].mxu0  ;;  %v1262_v35 = vadd.f32 %v1261_v19, %v2824_v31 }
 0x7b5   : > { %v1264_v27 = vpop.f32.mrb[42].mxu0 }
 0x7b6   : > { %v2475_v28 = vpop.f32.mrb[43].mxu0 }
 0x7b7   : > { %v257_v28 = vpop.xlane.xlu0 %256 }
 0x7bc   : > { %v2585_v29 = vpop.eup %2584 }
 0x7bd   : > { %v1274_v32 = vadd.f32 1.0, %v2585_v29  ;;  %v2587_v33 = vpop.eup %2586  ;;  %v438_v29 = vpop.xlane.xlu1 %437 }
 0x7be   : > { %v1283_v34 = vadd.f32 1.0, %v2587_v33  ;;  %v258_v33 = vstv %s2734_s18 }
 0x7bf   : > { %2588 = vrcp.f32 %v1274_v32  ;;  %v263_v32 = vand.u32 127, %v48_v0 }
 0x7c0   : > { %2590 = vrcp.f32 %v1283_v34 }
 0x7c9   : > { %v2589_v36 = vpop.eup %2588 }
 0x7ca   : > { %v1288_v38 = vmul.f32 %v2589_v36, %v1262_v35  ;;  %v2591_v40 = vpop.eup %2590  ;;  %v954_v35 = vpop.xlane.xlu1 %953  ;;  %v3031_v36 = vsub.s32 %v263_v32, %v2732_v9 }
 0x7cb   : > { %v1291_v41 = vsub.f32 1.0, %v2591_v40  ;;  %v1293_v43 = vmul.f32 %v2591_v40, %v1122_v58  ;;  %v2207_v58 = vld [vmem:[%s2820_s25 + $0xe] sm:$0x3] }
 0x7cc   : > { %v1289_v39 = vadd.f32 %v2197_v37, %v1288_v38  ;;  %3466 = vst [vmem:[#allocation5_spill] sm:$0xff] %v3031_v36  ;;  %v259_v37 = vadd.f32 %v258_v33, %v257_v28  ;;  %v439_v38 = vadd.f32 %v438_v29, %v258_v33 }
 0x7ce   : > { %2592 = vtanh.f32 %v1289_v39 }
 0x7d8   : > { %v2593_v42 = vpop.eup %2592 }
 0x7d9   : > { %v1292_v44 = vmul.f32 %v2593_v42, %v1291_v41 }
 0x7db   : > { %v1294_v45 = vadd.f32 %v1293_v43, %v1292_v44  ;;  %v267_v43 = vrot.slane %v259_v37, %v3031_v36  ;;  %v955_v44 = vadd.f32 %v954_v35, %v258_v33 }
 0x7dd   : > { %v1315_v46 = vpack.c.bf16 %v1294_v45, %v1294_v45  ;;  %v1295_v47 = vmul.f32 %v2729_v8, %v1294_v45 }
 0x7df   : > { %2481 = vmatmul.mubr.msk.bf16.vlgmr.msra.gmra.mrb[40].mxu1 %vm77_vm2, %v1315_v46  ;;  %2489 = vmatmul.mubr.msk.bf16.vlgmr.msra.gmra.mrb[44].mxu0 %vm77_vm2, %v1315_v46  ;;  %v1296_v48 = vsel %vm254_vm3, %v1295_v47, 0.0 }
 0x7e0   : > { %2493 = vmatpush3.bf16.msra.mxu1 %v2775_v16  ;;  %1297 = vadd.xlane.f32.xlu1 %v1296_v48 }
 0x7e1   : > { %2494 = vmatprep.subr.bf16.mxu1 %v2641_v13  ;;  %2496 = vmatprep.mubr.msk.bf16.mxu1 %vm2642_vm1, %v2641_v13  ;;  %vm1665_vm1 = vcmask (%p52_p0), 1042432  }
 0x7e4   : > { %2495 = vmatpush3.bf16.msra.mxu1 %v2783_v18 }
 0x7e7   : > { %2497 = vmatmul.mubr.msk.bf16.vlgmr.msra.gmra.mrb[44].mxu1 %vm77_vm2, %v1315_v46  ;;  %vm1706_vm2 = vcmask (%p52_p0), 1043456  }
 0x86d   : > { %v1298_v42 = vpop.xlane.xlu1 %1297 }
 0x86e   : > { %v1299_v48 = vadd.f32 %v1298_v42, %v258_v33 }
 0x8b2   : > { %v1353_v49 = vpop.f32.mrb[40].mxu1  ;;  %v1393_v51 = vpop.f32.mrb[44].mxu0 }
 0x8b3   : > { %v1354_v52 = vadd.f32 %v2724_v7, %v1353_v49  ;;  %v2482_v53 = vpop.f32.mrb[41].mxu1  ;;  %v2490_v54 = vpop.f32.mrb[45].mxu0  ;;  %v1394_v16 = vadd.f32 %v1393_v51, %v2822_v30  ;;  %v961_v51 = vrot.slane %v955_v44, %v3031_v36 }
 0x8b4   : > { %v1356_v55 = vpop.f32.mrb[42].mxu1  ;;  %v1396_v56 = vpop.f32.mrb[46].mxu0 }
 0x8b5   : > { %v1442_v57 = vadd.f32 %v2203_v50, %v1354_v52  ;;  %v2483_v59 = vpop.f32.mrb[43].mxu1  ;;  %v2491_v60 = vpop.f32.mrb[47].mxu0  ;;  %v1451_v18 = vadd.f32 %v2207_v58, %v1394_v16  ;;  %v281_v50 = vsel %vm260_vm4, %v267_v43, 0.0  ;;  %v1305_v16 = vrot.slane %v1299_v48, %v3031_v36 }
 0x8b6   :  { %vm1638_vm4 = vcmask (%p52_p0), 1045504  }
 0x8b7   : > { %v2204_v13 = vmul.f32 -1.442695, %v1442_v57  ;;  %v2208_v62 = vmul.f32 -1.442695, %v1451_v18 }
 0x8b9   : > { %2594 = vpow2.f32 %v2204_v13 }
 0x8ba   : > { %v1433_v61 = vpop.f32.mrb[44].mxu1  ;;  %2596 = vpow2.f32 %v2208_v62 }
 0x8bb   : > { %v2498_v12 = vpop.f32.mrb[45].mxu1  ;;  %v1434_v11 = vadd.f32 %v1433_v61, %v2824_v31  ;;  %v610_v31 = vpop.xlane.xlu0 %609  ;;  %v1496_v61 = vld [vmem:[%s3447_s7] sm:$0x3] (%p52_p0) }
 0x8bc   : > { %v1436_v63 = vpop.f32.mrb[46].mxu1  ;;  %v611_v39 = vadd.f32 %v610_v31, %v258_v33  ;;  %v2645_v12 = vmov (%p52_p0), 0   ;;  %vm1497_vm12 = vcmp.lt.s32.totalorder (%p52_p0), %v1496_v61, 24 }
 0x8bd   : > { %v2499_v1 = vpop.f32.mrb[47].mxu1  ;;  %2604 = vset.pattern.permute.xlu0 (%p52_p0), %v2645_v12  ;;  %2605 = vset.pattern.permute.xlu1 (%p52_p0), %v2645_v12  ;;  %v1498_v62 = vsel (%p52_p0), %vm1497_vm12, %v1496_v61, 24 }
 0x8be   : > { %v617_v47 = vrot.slane %v611_v39, %v3031_v36  ;;  %v1509_v63 = vadd.s32 (%p52_p0), 16, %v1498_v62  ;;  %vm1961_vm13 = vcmp.gt.s32.totalorder (%p52_p0), %v1498_v62, 1 }
 0x8bf   : > { %v782_v34 = vpop.xlane.xlu0 %781  ;;  %v1962_v1 = vsel (%p52_p0), %vm1961_vm13, %v1498_v62, 1 }
 0x8c0   : > { %v783_v41 = vadd.f32 %v782_v34, %v258_v33 }
 0x8c2   : > { %v789_v49 = vrot.slane %v783_v41, %v3031_v36 }
 0x8c3   : > { %v2595_v14 = vpop.eup %2594  ;;  %v1126_v40 = vpop.xlane.xlu0 %1125 }
 0x8c4   : > { %v1446_v5 = vadd.f32 1.0, %v2595_v14  ;;  %v2597_v30 = vpop.eup %2596  ;;  %v1127_v46 = vadd.f32 %v1126_v40, %v258_v33  ;;  %v1963_v14 = vcvt.s32.f32 (%p52_p0), %v1962_v1 }
 0x8c5   : > { %v1455_v10 = vadd.f32 1.0, %v2597_v30 }
 0x8c6   : > { %2598 = vrcp.f32 %v1446_v5  ;;  %v1133_v53 = vrot.slane %v1127_v46, %v3031_v36  ;;  %1980 = vperm.xlu1 (%p52_p0), %2605, %v1963_v14  }
 0x8c7   : > { %2600 = vrcp.f32 %v1455_v10 }
 0x8d0   : > { %v2599_v15 = vpop.eup %2598 }
 0x8d1   : > { %v1460_v17 = vmul.f32 %v2599_v15, %v1434_v11  ;;  %v2601_v22 = vpop.eup %2600 }
 0x8d2   : > { %v1463_v23 = vsub.f32 1.0, %v2601_v22  ;;  %v1465_v25 = vmul.f32 %v2601_v22, %v1294_v45  ;;  %v445_v45 = vrot.slane %v439_v38, %v3031_v36 }
 0x8d3   : > { %v1461_v21 = vadd.f32 %v2211_v20, %v1460_v17 }
 0x8d4   : > { %v453_v52 = vsel %vm440_vm5, %v445_v45, %v281_v50  ;;  %vm1593_vm5 = vcmask (%p52_p0), 1046528  }
 0x8d5   : > { %2602 = vtanh.f32 %v1461_v21  ;;  %v625_v54 = vsel %vm612_vm6, %v617_v47, %v453_v52 }
 0x8d6   : > { %v797_v56 = vsel %vm784_vm7, %v789_v49, %v625_v54 }
 0x8d7   : > { %v969_v58 = vsel %vm956_vm8, %v961_v51, %v797_v56 }
 0x8d8   : > { %v1141_v59 = vsel %vm1128_vm9, %v1133_v53, %v969_v58 }
 0x8d9   : > { %v1313_v13 = vsel %vm1300_vm10, %v1305_v16, %v1141_v59 }
 0x8df   : > { %v2603_v24 = vpop.eup %2602 }
 0x8e0   : > { %v1464_v19 = vmul.f32 %v2603_v24, %v1463_v23 }
 0x8e2   : > { %v1466_v11 = vadd.f32 %v1465_v25, %v1464_v19  }
 0x8e4   : > { %v1467_v26 = vmul.f32 %v2729_v8, %v1466_v11 }
 0x8e6   : > { %v1468_v27 = vsel %vm254_vm3, %v1467_v26, 0.0  ;;  %vm1679_vm3 = vcmask (%p52_p0), 1044480  }
 0x8e7   : > { %1469 = vadd.xlane.f32.xlu0 %v1468_v27 }
 0x8fd   :  { %1511 = vperm.xlu0 (%p52_p0), %2604, %v1509_v63  }
 0x901   :  { %1946 = vperm.xlu0 (%p52_p0), %2604, %v1498_v62  }
 0x974   : > { %v1470_v55 = vpop.xlane.xlu0 %1469  ;;  %54 = sbr.rel (!%p52_p0) target bundleno = 63 (0x3f), region = 84 }
 0x975   : > { %v1471_v57 = vadd.f32 %v1470_v55, %v258_v33 }
 0x977   : > { %v1477_v60 = vrot.slane %v1471_v57, %v3031_v36 }
 0x979   : > { %v1485_v18 = vsel %vm1472_vm11, %v1477_v60, %v1313_v13 }
 0x97a   : > { %2213 = vst.msk [vmem:[%s2093_s30 + $0x10] sm:$0xff] %vm40_vm0, %v1485_v18 }
 0x981   :  { %v3059_v5 = vld [vmem:[#allocation2 + $0x8] sm:$0xff]  ;;  %v3061_v30 = vld [vmem:[#allocation2 + $0x10] sm:$0xff]  ;;  %v3063_v0 = vld [vmem:[#allocation2 + $0x18] sm:$0xff] }
 0x982   :  { %v1576_v2 = vrot.slane %v3059_v5, 7  ;;  %v1577_v3 = vrot.slane %v3061_v30, 7  ;;  %v1579_v4 = vrot.slane %v3063_v0, 7  ;;  %v3068_v6 = vld [vmem:[#allocation2 + $0x20] sm:$0xff]  ;;  %v3070_v7 = vld [vmem:[#allocation2 + $0x28] sm:$0xff]  ;;  %v1542_v8 = vsub.f32 0.0, %v3063_v0 }
 0x983   :  { %v1581_v10 = vrot.slane %v3068_v6, 7  ;;  %v3452_v20 = vrot.slane %v3059_v5, 6  ;;  %v1626_v17 = vrot.slane %v3061_v30, 6  ;;  %v1628_v21 = vrot.slane %v3063_v0, 6  ;;  %v3121_v49 = vld [vmem:[#allocation2 + $0x30] sm:$0xff] }
 0x984   :  { %v3077_v11 = vsel %vm1575_vm14, %v1576_v2, %v1577_v3  ;;  %v3080_v15 = vsel %vm1575_vm14, %v1577_v3, %v1579_v4  ;;  %v1543_v22 = vsub.f32 0.0, %v3068_v6  ;;  %v1544_v23 = vsub.f32 0.0, %v3070_v7 }
 0x985   :  { %v1548_v24 = vmul.f32 1.442695, %v1542_v8  ;;  %v1582_v19 = vsel %vm1575_vm14, %v1579_v4, %v1581_v10  ;;  %v1630_v25 = vrot.slane %v3068_v6, 6  ;;  %v1586_v26 = vmin.f32 %v3061_v30, %v3077_v11 }
 0x986   :  { %v1587_v27 = vmin.f32 %v3063_v0, %v3080_v15  ;;  %v3451_v28 = vrot.slane %v3059_v5, 5  ;;  %v1667_v31 = vrot.slane %v3061_v30, 5  ;;  %v3098_v29 = vsel %vm1624_vm15, %v3452_v20, %v1626_v17 }
 0x987   :  { %v3101_v32 = vsel %vm1624_vm15, %v1626_v17, %v1628_v21  ;;  %v1669_v33 = vrot.slane %v3063_v0, 5  ;;  %v1550_v34 = vmul.f32 1.442695, %v1543_v22  ;;  %v1552_v35 = vmul.f32 1.442695, %v1544_v23 }
 0x988   :  { %2606 = vpow2.f32 %v1548_v24  ;;  %v1588_v37 = vmin.f32 %v3068_v6, %v1582_v19  ;;  %v1631_v38 = vsel %vm1624_vm15, %v1628_v21, %v1630_v25  ;;  %v1635_v39 = vmin.f32 %v1586_v26, %v3098_v29 }
 0x989   :  { %v1636_v40 = vmin.f32 %v1587_v27, %v3101_v32  ;;  %v3111_v41 = vsel %vm1665_vm1, %v3451_v28, %v1667_v31  ;;  %v1671_v42 = vrot.slane %v3068_v6, 5  ;;  %v3115_v43 = vsel %vm1665_vm1, %v1667_v31, %v1669_v33 }
 0x98a   :  { %3467 = vst [vmem:[#allocation6_spill] sm:$0xff] %v3111_v41  ;;  %3468 = vst [vmem:[#allocation7_spill] sm:$0xff] %v3115_v43  ;;  %v1707_v44 = vrot.slane %v3059_v5, 4  ;;  %v1708_v45 = vrot.slane %v3061_v30, 4  ;;  %v1710_v46 = vrot.slane %v3063_v0, 4  ;;  %2608 = vpow2.f32 %v1550_v34 }
 0x98b   :  { %2610 = vpow2.f32 %v1552_v35  ;;  %v1541_v47 = vsub.f32 0.0, %v3061_v30  ;;  %v1637_v48 = vmin.f32 %v1588_v37, %v1631_v38  ;;  %v1672_v50 = vsel %vm1665_vm1, %v1669_v33, %v1671_v42  ;;  %v1512_v33 = vpop.permute.xlu0 %1511 }
 0x98c   :  { %v1676_v51 = vmin.f32 %v1635_v39, %v3111_v41  ;;  %v1677_v52 = vmin.f32 %v1636_v40, %v3115_v43  ;;  %v1712_v53 = vrot.slane %v3068_v6, 4  ;;  %v1709_v54 = vsel %vm1706_vm2, %v1707_v44, %v1708_v45 }
 0x98d   :  { %v1711_v16 = vsel %vm1706_vm2, %v1708_v45, %v1710_v46  ;;  %v1746_v55 = vrot.slane %v3059_v5, 3  ;;  %v1747_v56 = vrot.slane %v3061_v30, 3  ;;  %v1749_v57 = vrot.slane %v3063_v0, 3 }
 0x98e   :  { %v1545_v58 = vsub.f32 0.0, %v3121_v49  ;;  %v1546_v59 = vmul.f32 1.442695, %v1541_v47  ;;  %v1678_v60 = vmin.f32 %v1637_v48, %v1672_v50  ;;  %v1713_v13 = vsel %vm1706_vm2, %v1710_v46, %v1712_v53 }
 0x98f   :  { %v1717_v18 = vmin.f32 %v1676_v51, %v1709_v54  ;;  %v1718_v61 = vmin.f32 %v1677_v52, %v1711_v16  ;;  %v1748_v62 = vsel %vm1679_vm3, %v1746_v55, %v1747_v56  ;;  %v1751_v63 = vrot.slane %v3068_v6, 3 }
 0x990   :  { %v1785_v1 = vrot.slane %v3059_v5, 2  ;;  %v1786_v14 = vrot.slane %v3061_v30, 2  ;;  %v1750_v3 = vsel %vm1679_vm3, %v1747_v56, %v1749_v57  ;;  %v1788_v4 = vrot.slane %v3063_v0, 2 }
 0x991   :  { %v1500_v8 = vadd.s32 24, %v2732_v9  ;;  %v1501_v10 = vadd.s32 32, %v2732_v9  ;;  %v1554_v17 = vmul.f32 1.442695, %v1545_v58  ;;  %2612 = vpow2.f32 %v1546_v59  ;;  %v3175_v58 = vld [vmem:[#allocation2] sm:$0xff] }
 0x992   :  { %v2607_v12 = vpop.eup %2606  ;;  %v1719_v22 = vmin.f32 %v1678_v60, %v1713_v13  ;;  %v1756_v23 = vmin.f32 %v1717_v18, %v1748_v62  ;;  %v1790_v24 = vrot.slane %v3068_v6, 2  ;;  %v1502_v25 = vadd.s32 40, %v2732_v9 }
 0x993   :  { %v1752_v26 = vsel %vm1679_vm3, %v1749_v57, %v1751_v63  ;;  %v1757_v27 = vmin.f32 %v1718_v61, %v1750_v3  ;;  %v1787_v31 = vsel %vm1638_vm4, %v1785_v1, %v1786_v14  ;;  %v3147_v34 = vadd.s32 16, %v2732_v9 }
 0x994   :  { %v2609_v21 = vpop.eup %2608  ;;  %v1789_v35 = vsel %vm1638_vm4, %v1786_v14, %v1788_v4  ;;  %v1518_v37 = vrot.slane %v1512_v33, %v3031_v36  ;;  %2614 = vpow2.f32 %v1554_v17  ;;  %v1824_v38 = vrot.slane %v3059_v5, 1 }
 0x995   :  { %v2611_v19 = vpop.eup %2610  ;;  %3469 = vst [vmem:[#allocation8_spill] sm:$0xff] %v3147_v34  ;;  %v1825_v39 = vrot.slane %v3061_v30, 1  ;;  %v1758_v40 = vmin.f32 %v1719_v22, %v1752_v26  ;;  %v1791_v42 = vsel %vm1638_vm4, %v1788_v4, %v1790_v24  ;;  %v1795_v44 = vmin.f32 %v1756_v23, %v1787_v31 }
 0x996   :  { %v1827_v45 = vrot.slane %v3063_v0, 1  ;;  %vm1532_vm6 = vcmp.lt.s32.totalorder %v1500_v8, %v1518_v37  ;;  %vm1533_vm7 = vcmp.lt.s32.totalorder %v1501_v10, %v1518_v37  ;;  %vm1534_vm8 = vcmp.lt.s32.totalorder %v1502_v25, %v1518_v37 }
 0x997   :  { %v1796_v46 = vmin.f32 %v1757_v27, %v1789_v35  ;;  %v3155_v47 = vsel %vm1532_vm6, %v2607_v12, 0.0  ;;  %v3157_v48 = vsel %vm1533_vm7, %v2609_v21, 0.0  ;;  %v3159_v50 = vsel %vm1534_vm8, %v2611_v19, 0.0 }
 0x998   :  { %v1829_v51 = vrot.slane %v3068_v6, 1  ;;  %v1562_v52 = vsel %vm1532_vm6, %v3063_v0, 0.0  ;;  %v1563_v53 = vsel %vm1533_vm7, %v3068_v6, 0.0  ;;  %v1564_v54 = vsel %vm1534_vm8, %v3070_v7, 0.0 }
 0x999   :  { %v1826_v16 = vsel %vm1593_vm5, %v1824_v38, %v1825_v39  ;;  %v3167_v55 = vmul.f32 %v1562_v52, %v3155_v47  ;;  %v3170_v56 = vmul.f32 %v1563_v53, %v3157_v48  ;;  %v3173_v57 = vmul.f32 %v1564_v54, %v3159_v50 }
 0x99a   :  { %v1828_v59 = vsel %vm1593_vm5, %v1825_v39, %v1827_v45  ;;  %v1503_v6 = vadd.s32 48, %v2732_v9  ;;  %v3179_v13 = vmin.f32 %v1758_v40, %v1791_v42  ;;  %v3182_v7 = vsel %vm1593_vm5, %v1827_v45, %v1829_v51 }
 0x99b   :  { %v2613_v60 = vpop.eup %2612  ;;  %v1834_v18 = vmin.f32 %v1795_v44, %v1826_v16  ;;  %vm1531_vm9 = vcmp.lt.s32.totalorder %v3147_v34, %v1518_v37  ;;  %v1595_v61 = vrot.slane %v3167_v55, 1  ;;  %v1835_v12 = vmin.f32 %v1796_v46, %v1828_v59 }
 0x99c   :  { %v1873_v62 = vrot.slane %v3175_v58, 7  ;;  %v3187_v63 = vsel %vm1531_vm9, %v2613_v60, 0.0  ;;  %v1561_v1 = vsel %vm1531_vm9, %v3061_v30, 0.0  ;;  %v1597_v14 = vrot.slane %v3170_v56, 1 }
 0x99d   :  { %v3450_v3 = vrot.slane %v3173_v57, 1  ;;  %vm1535_vm10 = vcmp.lt.s32.totalorder %v1503_v6, %v1518_v37  ;;  %v3193_v8 = vmul.f32 %v1561_v1, %v3187_v63  ;;  %v3455_v17 = vrot.slane %v3159_v50, 1 }
 0x99e   :  { %v2615_v4 = vpop.eup %2614  ;;  %v1611_v21 = vrot.slane %v3187_v63, 1  ;;  %v1612_v22 = vrot.slane %v3155_v47, 1  ;;  %v1614_v23 = vrot.slane %v3157_v48, 1  ;;  %v3203_v19 = vmin.f32 %v1834_v18, %v3059_v5 }
 0x99f   :  { %v1594_v24 = vrot.slane %v3193_v8, 1  ;;  %v3206_v25 = vmin.f32 %v1835_v12, %v3061_v30  ;;  %v3211_v26 = vsel %vm1575_vm14, %v1873_v62, %v1576_v2  ;;  %v3213_v27 = vsel %vm1535_vm10, %v2615_v4, 0.0 }
 0x9a0   :  { %v3216_v31 = vsel %vm1535_vm10, %v3121_v49, 0.0  ;;  %v3219_v33 = vsel %vm1593_vm5, %v1595_v61, %v1597_v14  ;;  %v3224_v35 = vsel %vm1593_vm5, %v1597_v14, %v3450_v3  ;;  %v3453_v30 = vrot.slane %v3159_v50, 2 }
 0x9a1   :  { %v1596_v37 = vsel %vm1593_vm5, %v1594_v24, %v1595_v61  ;;  %v1640_v2 = vrot.slane %v3167_v55, 2  ;;  %v1642_v38 = vrot.slane %v3170_v56, 2  ;;  %v1613_v39 = vsel %vm1593_vm5, %v1611_v21, %v1612_v22 }
 0x9a2   :  { %v3232_v49 = vsel %vm1593_vm5, %v1612_v22, %v1614_v23  ;;  %v3237_v40 = vsel %vm1593_vm5, %v1614_v23, %v3455_v17  ;;  %v3449_v42 = vrot.slane %v3173_v57, 2  ;;  %v1605_v45 = vadd.f32 %v3219_v33, %v3167_v55 }
 0x9a3   :  { %v1606_v46 = vadd.f32 %v3224_v35, %v3170_v56  ;;  %v1639_v51 = vrot.slane %v3193_v8, 2  ;;  %v1604_v53 = vadd.f32 %v1596_v37, %v3193_v8  ;;  %v1652_v54 = vrot.slane %v3187_v63, 2 }
 0x9a4   :  { %v1653_v16 = vrot.slane %v3155_v47, 2  ;;  %v1621_v59 = vadd.f32 %v1613_v39, %v3187_v63  ;;  %v1622_v60 = vadd.f32 %v3232_v49, %v3155_v47  ;;  %v1623_v6 = vadd.f32 %v3237_v40, %v3157_v48 }
 0x9a5   :  { %v1655_v18 = vrot.slane %v3157_v48, 2  ;;  %v3257_v61 = vsel %vm1638_vm4, %v1640_v2, %v1642_v38  ;;  %v3262_v12 = vsel %vm1638_vm4, %v1642_v38, %v3449_v42  ;;  %v1680_v62 = vrot.slane %v3193_v8, 3 }
 0x9a6   :  { %v1681_v1 = vrot.slane %v3167_v55, 3  ;;  %v1641_v14 = vsel %vm1638_vm4, %v1639_v51, %v1640_v2  ;;  %v1650_v4 = vadd.f32 %v3257_v61, %v1605_v45  ;;  %v1651_v21 = vadd.f32 %v3262_v12, %v1606_v46 }
 0x9a7   :  { %v1683_v22 = vrot.slane %v3170_v56, 3  ;;  %v1649_v23 = vadd.f32 %v1641_v14, %v1604_v53  ;;  %v1654_v24 = vsel %vm1638_vm4, %v1652_v54, %v1653_v16  ;;  %v3454_v37 = vrot.slane %v3173_v57, 3 }
 0x9a8   :  { %v1693_v38 = vrot.slane %v3187_v63, 3  ;;  %v3274_v39 = vsel %vm1638_vm4, %v1653_v16, %v1655_v18  ;;  %v3279_v2 = vsel %vm1638_vm4, %v1655_v18, %v3453_v30  ;;  %v1662_v45 = vadd.f32 %v1654_v24, %v1621_v59 }
 0x9a9   :  { %v1694_v46 = vrot.slane %v3155_v47, 3  ;;  %v1663_v51 = vadd.f32 %v3274_v39, %v1622_v60  ;;  %v1682_v53 = vsel %vm1679_vm3, %v1680_v62, %v1681_v1  ;;  %v1696_v54 = vrot.slane %v3157_v48, 3 }
 0x9aa   :  { %v3456_v14 = vrot.slane %v3159_v50, 3  ;;  %v1664_v42 = vadd.f32 %v3279_v2, %v1623_v6  ;;  %v3288_v16 = vsel %vm1679_vm3, %v1681_v1, %v1683_v22  ;;  %v1720_v3 = vrot.slane %v3193_v8, 4 }
 0x9ab   :  { %v1721_v18 = vrot.slane %v3167_v55, 4  ;;  %v3295_v59 = vsel %vm1679_vm3, %v1683_v22, %v3454_v37  ;;  %v1690_v60 = vadd.f32 %v1682_v53, %v1649_v23  ;;  %v1723_v62 = vrot.slane %v3170_v56, 4 }
 0x9ac   :  { %3470 = vst [vmem:[#allocation9_spill] sm:$0xff] %v3295_v59  ;;  %v1725_v24 = vrot.slane %v3173_v57, 4  ;;  %v1691_v28 = vadd.f32 %v3288_v16, %v1650_v4  ;;  %v1695_v6 = vsel %vm1679_vm3, %v1693_v38, %v1694_v46  ;;  %v1733_v1 = vrot.slane %v3187_v63, 4 }
 0x9ad   :  { %v1734_v20 = vrot.slane %v3155_v47, 4  ;;  %v1692_v10 = vadd.f32 %v3295_v59, %v1651_v21  ;;  %v3305_v30 = vsel %vm1679_vm3, %v1694_v46, %v1696_v54  ;;  %v3310_v22 = vsel %vm1679_vm3, %v1696_v54, %v3456_v14 }
 0x9ae   :  { %v1703_v23 = vadd.f32 %v1695_v6, %v1662_v45  ;;  %v1704_v53 = vadd.f32 %v3305_v30, %v1663_v51  ;;  %v1722_v4 = vsel %vm1706_vm2, %v1720_v3, %v1721_v18  ;;  %v1736_v38 = vrot.slane %v3157_v48, 4 }
 0x9af   :  { %v1738_v37 = vrot.slane %v3159_v50, 4  ;;  %v1705_v17 = vadd.f32 %v3310_v22, %v1664_v42  ;;  %v1724_v21 = vsel %vm1706_vm2, %v1721_v18, %v1723_v62  ;;  %v1726_v46 = vsel %vm1706_vm2, %v1723_v62, %v1725_v24 }
 0x9b0   :  { %v1759_v52 = vrot.slane %v3193_v8, 5  ;;  %v1735_v54 = vsel %vm1706_vm2, %v1733_v1, %v1734_v20  ;;  %v1760_v45 = vrot.slane %v3167_v55, 5  ;;  %v1762_v51 = vrot.slane %v3170_v56, 5 }
 0x9b1   :  { %v1772_v3 = vrot.slane %v3187_v63, 5  ;;  %v1730_v6 = vadd.f32 %v1722_v4, %v1690_v60  ;;  %v1743_v14 = vadd.f32 %v1735_v54, %v1703_v23  ;;  %v1764_v44 = vrot.slane %v3173_v57, 5 }
 0x9b2   :  { %v1773_v42 = vrot.slane %v3155_v47, 5  ;;  %v1737_v18 = vsel %vm1706_vm2, %v1734_v20, %v1736_v38  ;;  %v1739_v62 = vsel %vm1706_vm2, %v1736_v38, %v1738_v37  ;;  %v1775_v24 = vrot.slane %v3157_v48, 5 }
 0x9b3   :  { %v1777_v1 = vrot.slane %v3159_v50, 5  ;;  %v1731_v34 = vadd.f32 %v1724_v21, %v1691_v28  ;;  %v1732_v9 = vadd.f32 %v1726_v46, %v1692_v10  ;;  %v1744_v36 = vadd.f32 %v1737_v18, %v1704_v53 }
 0x9b4   :  { %v1745_v59 = vadd.f32 %v1739_v62, %v1705_v17  ;;  %v1761_v43 = vsel %vm1665_vm1, %v1759_v52, %v1760_v45  ;;  %v1763_v60 = vsel %vm1665_vm1, %v1760_v45, %v1762_v51  ;;  %v1774_v23 = vsel %vm1665_vm1, %v1772_v3, %v1773_v42 }
 0x9b5   :  { %v1811_v4 = vrot.slane %v3187_v63, 6  ;;  %v1765_v20 = vsel %vm1665_vm1, %v1762_v51, %v1764_v44  ;;  %v1782_v54 = vadd.f32 %v1774_v23, %v1743_v14  ;;  %v1798_v37 = vrot.slane %v3193_v8, 6 }
 0x9b6   :  { %v1799_v38 = vrot.slane %v3167_v55, 6  ;;  %v1769_v41 = vadd.f32 %v1761_v43, %v1730_v6  ;;  %v1776_v28 = vsel %vm1665_vm1, %v1773_v42, %v1775_v24  ;;  %v1778_v10 = vsel %vm1665_vm1, %v1775_v24, %v1777_v1 }
 0x9b7   :  { %v1812_v17 = vrot.slane %v3155_v47, 6  ;;  %v1770_v52 = vadd.f32 %v1763_v60, %v1731_v34  ;;  %v1783_v53 = vadd.f32 %v1776_v28, %v1744_v36  ;;  %v1784_v21 = vadd.f32 %v1778_v10, %v1745_v59 }
 0x9b8   :  { %v1814_v46 = vrot.slane %v3157_v48, 6  ;;  %v1801_v45 = vrot.slane %v3170_v56, 6  ;;  %v1850_v14 = vrot.slane %v3187_v63, 7  ;;  %v1851_v51 = vrot.slane %v3155_v47, 7 }
 0x9b9   :  { %v1813_v44 = vsel %vm1624_vm15, %v1811_v4, %v1812_v17  ;;  %v1771_v43 = vadd.f32 %v1765_v20, %v1732_v9  ;;  %v1800_v3 = vsel %vm1624_vm15, %v1798_v37, %v1799_v38  ;;  %v1803_v6 = vrot.slane %v3173_v57, 6 }
 0x9ba   :  { %v1821_v42 = vadd.f32 %v1813_v44, %v1782_v54  ;;  %v1815_v34 = vsel %vm1624_vm15, %v1812_v17, %v1814_v46  ;;  %v3471_v36 = vrot.slane %v3159_v50, 6  ;;  %v1837_v18 = vrot.slane %v3193_v8, 7 }
 0x9bb   :  { %v1838_v62 = vrot.slane %v3167_v55, 7  ;;  %v1808_v24 = vadd.f32 %v1800_v3, %v1769_v41  ;;  %v1822_v63 = vadd.f32 %v1815_v34, %v1783_v53  ;;  %v1852_v9 = vsel %vm1575_vm14, %v1850_v14, %v1851_v51 }
 0x9bc   :  { %v1817_v59 = vsel %vm1624_vm15, %v1814_v46, %v3471_v36  ;;  %v1887_v60 = vrot.slane %v3213_v27, 1  ;;  %v1802_v23 = vsel %vm1624_vm15, %v1799_v38, %v1801_v45  ;;  %v1853_v4 = vrot.slane %v3157_v48, 7 }
 0x9bd   :  { %v1823_v1 = vadd.f32 %v1817_v59, %v1784_v21  ;;  %v1860_v20 = vadd.f32 %v1852_v9, %v1821_v42  ;;  %v1804_v54 = vsel %vm1624_vm15, %v1801_v45, %v1803_v6  ;;  %v1809_v37 = vadd.f32 %v1802_v23, %v1770_v52 }
 0x9be   :  { %v1840_v28 = vrot.slane %v3170_v56, 7  ;;  %v1842_v8 = vrot.slane %v3173_v57, 7  ;;  %v1839_v41 = vsel %vm1575_vm14, %v1837_v18, %v1838_v62  ;;  %v1854_v10 = vsel %vm1575_vm14, %v1851_v51, %v1853_v4 }
 0x9bf   :  { %v3472_v17 = vrot.slane %v3159_v50, 7  ;;  %v1869_v38 = vadd.f32 %v1860_v20, %v3155_v47  ;;  %v1810_v21 = vadd.f32 %v1804_v54, %v1771_v43  ;;  %v1847_v46 = vadd.f32 %v1839_v41, %v1808_v24 }
 0x9c0   :  { %v1861_v44 = vadd.f32 %v1854_v10, %v1822_v63  ;;  %v1570_v52 = vmul.f32 %v3216_v31, %v3213_v27  ;;  %v1905_v45 = vrot.slane %v3213_v27, 2  ;;  %v1893_v6 = vrot.slane %v3175_v58, 6 }
 0x9c1   :  { %v1856_v53 = vsel %vm1575_vm14, %v1853_v4, %v3472_v17  ;;  %v1890_v3 = vadd.f32 %v1869_v38, %v3232_v49  ;;  %v1923_v51 = vrot.slane %v3213_v27, 3  ;;  %v1841_v42 = vsel %vm1575_vm14, %v1838_v62, %v1840_v28 }
 0x9c2   :  { %v1862_v14 = vadd.f32 %v1856_v53, %v1823_v1  ;;  %v1870_v34 = vadd.f32 %v1861_v44, %v3157_v48  ;;  %v3473_v43 = vrot.slane %v3159_v50, 1  ;;  %v1843_v31 = vsel %vm1575_vm14, %v1840_v28, %v1842_v8 }
 0x9c3   :  { %v1848_v59 = vadd.f32 %v1841_v42, %v1809_v37  ;;  %v1908_v18 = vadd.f32 %v1890_v3, %v3274_v39  ;;  %v1849_v49 = vadd.f32 %v1843_v31, %v1810_v21  ;;  %v1866_v24 = vadd.f32 %v1847_v46, %v3167_v55  ;;  %v1947_v46 = vpop.permute.xlu0 %1946 }
 0x9c4   :  { %v1871_v47 = vadd.f32 %v1862_v14, %v3159_v50  ;;  %v1888_v36 = vsel %vm1593_vm5, %v3473_v43, %v1887_v60  ;;  %v1891_v27 = vadd.f32 %v1870_v34, %v3237_v40  ;;  %v3474_v62 = vrot.slane %v3159_v50, 2  ;;  %v3484_v34 = vld [vmem:[#allocation9_spill] sm:$0xff] }
 0x9c5   :  { %v3475_v1 = vmin.f32 %v3179_v13, %v3182_v7  ;;  %v1876_v60 = vmin.f32 %v3203_v19, %v3211_v26  ;;  %v1926_v39 = vadd.f32 %v1908_v18, %v3305_v30  ;;  %v3476_v23 = vrot.slane %v3059_v5, 6  ;;  %v3485_v43 = vld [vmem:[#allocation5_spill] sm:$0xff] }
 0x9c6   :  { %v1892_v63 = vadd.f32 %v1888_v36, %v1871_v47  ;;  %v1906_v48 = vsel %vm1638_vm4, %v3474_v62, %v1905_v45  ;;  %v1909_v40 = vadd.f32 %v1891_v27, %v3279_v2  ;;  %v1911_v20 = vrot.slane %v3175_v58, 5  ;;  %v3481_v45 = vld [vmem:[#allocation6_spill] sm:$0xff] }
 0x9c7   :  { %v1865_v9 = vmin.f32 %v3475_v1, %v3063_v0  ;;  %v1894_v55 = vsel %vm1624_vm15, %v1893_v6, %v3476_v23  ;;  %v1880_v54 = vrot.slane %v1570_v52, 1  ;;  %v1867_v37 = vadd.f32 %v1848_v59, %v3170_v56 }
 0x9c8   :  { %v1910_v4 = vadd.f32 %v1906_v48, %v1892_v63  ;;  %v3477_v13 = vrot.slane %v3159_v50, 3  ;;  %2616 = vrcp.f32 %v1926_v39  ;;  %v1868_v7 = vadd.f32 %v1849_v49, %v3173_v57  ;;  %v3486_v49 = vld [vmem:[#allocation4_spill] sm:$0xff] }
 0x9c9   :  { %v1883_v19 = vadd.f32 %v1866_v24, %v3219_v33  ;;  %v1927_v26 = vadd.f32 %v1909_v40, %v3310_v22  ;;  %v1877_v2 = vmin.f32 %v3206_v25, %v3077_v11  ;;  %v1878_v58 = vmin.f32 %v1865_v9, %v3080_v15 }
 0x9ca   :  { %v1924_v0 = vsel %vm1679_vm3, %v3477_v13, %v1923_v51  ;;  %v1896_v28 = vmin.f32 %v1876_v60, %v1894_v55  ;;  %v3478_v56 = vrot.slane %v3059_v5, 5  ;;  %v3479_v8 = vrot.slane %v3173_v57, 1  ;;  %v1981_v60 = vpop.permute.xlu1 %1980  ;;  %v3487_v55 = vld [vmem:[#allocation8_spill] sm:$0xff] }
 0x9cb   :  { %v1928_v30 = vadd.f32 %v1924_v0, %v1910_v4  ;;  %2618 = vrcp.f32 %v1927_v26  ;;  %v1884_v33 = vadd.f32 %v1867_v37, %v3224_v35  ;;  %v1899_v10 = vrot.slane %v1570_v52, 2 }
 0x9cc   :  { %v1912_v50 = vsel %vm1665_vm1, %v1911_v20, %v3478_v56  ;;  %v1881_v41 = vsel %vm1593_vm5, %v3479_v8, %v1880_v54  ;;  %v1902_v17 = vadd.f32 %v1883_v19, %v3257_v61  ;;  %v1897_v11 = vmin.f32 %v1877_v2, %v3098_v29  ;;  %v3482_v61 = vld [vmem:[#allocation7_spill] sm:$0xff] }
 0x9cd   :  { %2620 = vrcp.f32 %v1928_v30  ;;  %v1885_v22 = vadd.f32 %v1881_v41, %v1868_v7  ;;  %v1898_v15 = vmin.f32 %v1878_v58, %v3101_v32  ;;  %v1914_v25 = vmin.f32 %v1896_v28, %v1912_v50 }
 0x9ce   :  { %v3480_v5 = vrot.slane %v3173_v57, 2  ;;  %v1903_v38 = vadd.f32 %v1884_v33, %v3262_v12  ;;  %v1917_v21 = vrot.slane %v1570_v52, 3  ;;  %v1920_v35 = vadd.f32 %v1902_v17, %v3288_v16 }
 0x9cf   :  { %v1915_v3 = vmin.f32 %v1897_v11, %v3481_v45  ;;  %v1916_v6 = vmin.f32 %v1898_v15, %v3482_v61  ;;  %v1938_v51 = vmul.f32 0.5, %v1914_v25  ;;  %v3483_v32 = vrot.slane %v3173_v57, 3 }
 0x9d0   :  { %v1900_v53 = vsel %vm1638_vm4, %v3480_v5, %v1899_v10  ;;  %v1921_v47 = vadd.f32 %v1903_v38, %v3484_v34  ;;  %v1951_v12 = vrot.slane %v1947_v46, %v3485_v43  ;;  %v1944_v24 = vadd.s32 8, %v3486_v49 }
 0x9d1   :  { %v1904_v44 = vadd.f32 %v1900_v53, %v1885_v22  ;;  %v1918_v42 = vsel %vm1679_vm3, %v3483_v32, %v1917_v21  ;;  %v1939_v18 = vmul.f32 0.5, %v1915_v3  ;;  %v1940_v63 = vmul.f32 0.5, %v1916_v6 }
 0x9d2   :  { %v2617_v14 = vpop.eup %2616  ;;  %vm1958_vm11 = vcmp.lt.s32.totalorder %v3486_v49, %v1951_v12  ;;  %vm1959_vm12 = vcmp.lt.s32.totalorder %v1944_v24, %v1951_v12  ;;  %vm1960_vm13 = vcmp.lt.s32.totalorder %v3487_v55, %v1951_v12  ;;  %v1985_v54 = vrot.slane %v1981_v60, %v3485_v43 }
 0x9d3   :  { %v1930_v29 = vmul.f32 %v2617_v14, %v1920_v35  ;;  %v1922_v36 = vadd.f32 %v1918_v42, %v1904_v44  ;;  %v1991_v56 = vsub.s32 0, %v3486_v49  ;;  %vm1996_vm14 = vcmask 1024  }
 0x9d4   :  { %2622 = vrcp.f32 %v1985_v54 }
 0x9d5   :  { %v2619_v52 = vpop.eup %2618  ;;  %v1935_v31 = vmul.f32 0.5, %v1930_v29 }
 0x9d6   :  { %v1932_v16 = vmul.f32 %v2619_v52, %v1921_v47 }
 0x9d7   :  { %v2621_v59 = vpop.eup %2620  ;;  %v1941_v62 = vadd.f32 %v1938_v51, %v1935_v31 }
 0x9d8   :  { %v1934_v27 = vmul.f32 %v2621_v59, %v1922_v36  ;;  %v1936_v48 = vmul.f32 0.5, %v1932_v16 }
 0x9d9   :  { %v1964_v1 = vsel %vm1958_vm11, %v1941_v62, 0.0 }
 0x9da   :  { %v1937_v57 = vmul.f32 0.5, %v1934_v27  ;;  %v1942_v9 = vadd.f32 %v1939_v18, %v1936_v48  ;;  %v1967_v23 = vsel %vm40_vm0, %v1964_v1, 0.0 }
 0x9dc   :  { %v1943_v39 = vadd.f32 %v1940_v63, %v1937_v57  ;;  %v1965_v40 = vsel %vm1959_vm12, %v1942_v9, 0.0 }
 0x9dd   :  { %v1968_v20 = vsel %vm40_vm0, %v1965_v40, 0.0 }
 0x9de   :  { %v1966_v4 = vsel %vm1960_vm13, %v1943_v39, 0.0  ;;  %v1969_v37 = vadd.f32 %v1968_v20, %v1967_v23  ;;  %v2623_v58 = vpop.eup %2622 }
 0x9df   :  { %v1970_v13 = vsel %vm40_vm0, %v1966_v4, 0.0 }
 0x9e0   :  { %v1971_v0 = vadd.f32 %v1970_v13, %v1969_v37 }
 0x9e2   :  { %v1972_v7 = vrot.slane %v1971_v0, 4 }
 0x9e4   :  { %v1973_v19 = vadd.f32 %v1972_v7, %v1971_v0 }
 0x9e6   :  { %v1974_v26 = vrot.slane %v1973_v19, 2 }
 0x9e8   :  { %v1975_v30 = vadd.f32 %v1974_v26, %v1973_v19 }
 0x9ea   :  { %v1976_v2 = vrot.slane %v1975_v30, 1 }
 0x9ec   :  { %v1977_v28 = vadd.f32 %v1976_v2, %v1975_v30 }
 0x9ee   :  { %v1988_v50 = vmul.f32 %v2623_v58, %v1977_v28 }
 0x9f0   :  { %v1992_v8 = vrot.slane %v1988_v50, %v1991_v56 }
 0x9f2   :  { %1994 = vbcast.lane.b32.xlu1 %v1992_v8, 256 }
 0xa64   :  { %v1995_v41 = vpop.permute.xlu1 %1994 }
 0xa65   :  { %1997 = vst.msk [vmem:[%s3448_s8] sm:$0x3] %vm1996_vm14, %v1995_v41 }

</bundles_post_ra>
